<compile_context>
chip_gen: v5e
topology: v5e:2x2
jax: 0.10.0
libtpu: 0.0.40
codegen_flags: <defaults>
</compile_context>

<pallas_src>
import math
import numpy as np
import jax
import jax.numpy as jnp
from jax.experimental import pallas as pl
from jax.experimental.pallas import tpu as pltpu

# ----- small, module-consistent sizes -----
B, L = 2, 8            # batch, sequence length
E, H = 32, 32          # embedding_size, hidden_size
NUM_HEADS = 4
DK = 32                # total_key_depth
DV = 32                # total_value_depth
FF = 64                # filter_size
NL = 2                 # num_layers
MAX_LEN = 64           # max_length for the timing signal
EPS = 1e-6
HDK = DK // NUM_HEADS  # per-head key depth
HDV = DV // NUM_HEADS  # per-head value depth
SCALE = HDK ** -0.5


# ===================== in-kernel math helpers =====================
def _ln_k(x, g, b):
    # torch-style custom LayerNorm: unbiased std (N-1), eps added to std.
    # x: (R, H) 2D, g/b: (1, H).  Reciprocal goes to the EUP slot.
    mean = jnp.mean(x, axis=-1, keepdims=True)
    var = jnp.sum((x - mean) ** 2, axis=-1, keepdims=True) * (1.0 / (H - 1))
    inv = pl.reciprocal(jnp.sqrt(var) + EPS, approx=True)
    return g * (x - mean) * inv + b


def _conv_k3_k(x2, w_flat, bias, prev_ok, next_ok):
    # im2col conv1d(k=3, zero pad 1/1) on the flattened (B*L, Cin) activation.
    # w_flat: (3*Cin, Cout) with rows [k=0 | k=1 | k=2]; bias: (1, Cout).
    # prev_ok/next_ok mask out rows that would leak across batch boundaries
    # (they correspond to the zero padding of each sequence).
    x_prev = jnp.where(prev_ok, pltpu.roll(x2, shift=1, axis=0), 0.0)
    x_next = jnp.where(next_ok, pltpu.roll(x2, shift=B * L - 1, axis=0), 0.0)
    patches = jnp.concatenate([x_prev, x2, x_next], axis=-1)        # (B*L, 3*Cin)
    return jnp.dot(patches, w_flat, preferred_element_type=jnp.float32) + bias


# ===================== Pallas kernel =====================
def encoder_kernel(inp_ref, bias_ref, wemb_ref, timing_ref,
                   ln1g_ref, ln1b_ref, wqkv_ref, wo_ref,
                   ln2g_ref, ln2b_ref, c1w_ref, c1b_ref, c2w_ref, c2b_ref,
                   lnfg_ref, lnfb_ref, out_ref):
    # x = embedding_proj(inputs) + timing_signal   (kept 2D, (B*L, H))
    x = jnp.dot(inp_ref[...], wemb_ref[...], preferred_element_type=jnp.float32)
    x = x + timing_ref[...]

    attn_bias = bias_ref[...]                      # (B, 1, L) additive (-1e18 at pads)

    # conv shift validity masks (hoisted out of the layer loop)
    row = jax.lax.broadcasted_iota(jnp.int32, (B * L, 1), 0)
    prev_ok = (row % L) != 0
    next_ok = (row % L) != (L - 1)

    for l in range(NL):                            # static in-kernel layer loop
        # ---------- multi-head self-attention sub-layer ----------
        xn = _ln_k(x, ln1g_ref[l], ln1b_ref[l])
        # fused QKV projection (query scale already folded into the weight)
        qkv = jnp.dot(xn, wqkv_ref[l], preferred_element_type=jnp.float32)   # (B*L, 96)
        qkv3 = qkv.reshape(B, L, 2 * DK + DV)

        ctx_heads = []
        for h in range(NUM_HEADS):                 # static unroll; einsums batched over B
            qh = qkv3[:, :, h * HDK:(h + 1) * HDK]
            kh = qkv3[:, :, DK + h * HDK:DK + (h + 1) * HDK]
            vh = qkv3[:, :, 2 * DK + h * HDV:2 * DK + (h + 1) * HDV]
            logits = jnp.einsum('bqd,bkd->bqk', qh, kh,
                                preferred_element_type=jnp.float32) + attn_bias
            m = jnp.max(logits, axis=-1, keepdims=True)
            e = jnp.exp(logits - m)
            p = e * pl.reciprocal(jnp.sum(e, axis=-1, keepdims=True), approx=True)
            ctx_heads.append(jnp.einsum('bqk,bkd->bqd', p, vh,
                                        preferred_element_type=jnp.float32))
        # concat heads then ONE output projection (== head-slice-wise projection sum)
        ctx = jnp.concatenate(ctx_heads, axis=-1).reshape(B * L, DV)
        x = x + jnp.dot(ctx, wo_ref[l], preferred_element_type=jnp.float32)

        # ---------- position-wise FFN: Conv(k=3) -> ReLU -> Conv(k=3) ----------
        xn = _ln_k(x, ln2g_ref[l], ln2b_ref[l])
        h1 = jnp.maximum(_conv_k3_k(xn, c1w_ref[l], c1b_ref[l], prev_ok, next_ok), 0.0)
        x = x + _conv_k3_k(h1, c2w_ref[l], c2b_ref[l], prev_ok, next_ok)

    # final LayerNorm, lane-dense 2D store
    out_ref[...] = _ln_k(x, lnfg_ref[...], lnfb_ref[...])


def encoder_forward(inputs, maskf, params):
    (w_emb, timing, ln1g, ln1b, wq, wk, wv, wo,
     ln2g, ln2b, c1w, c1b, c2w, c2b, lnfg, lnfb) = params

    # ----- one-time layout plumbing outside the kernel (cheap XLA ops) -----
    inp2d = inputs.reshape(B * L, E)
    timing2d = jnp.tile(timing, (B, 1))                                   # (B*L, H)
    attn_bias = jnp.where(maskf > 0, -1e18, 0.0).astype(jnp.float32)      # (B, 1, L)
    wqkv = jnp.concatenate([wq * SCALE, wk, wv], axis=-1)                 # (NL, H, 2*DK+DV)
    c1w_flat = c1w.reshape(NL, 3 * H, FF)
    c2w_flat = c2w.reshape(NL, 3 * FF, H)
    lnfg2 = lnfg.reshape(1, H)
    lnfb2 = lnfb.reshape(1, H)

    vmem = pl.BlockSpec(memory_space=pltpu.MemorySpace.VMEM)
    out2d = pl.pallas_call(
        encoder_kernel,
        out_shape=jax.ShapeDtypeStruct((B * L, H), jnp.float32),
        in_specs=[vmem] * 16,
        out_specs=vmem,
    )(inp2d, attn_bias, w_emb, timing2d, ln1g, ln1b, wqkv, wo,
      ln2g, ln2b, c1w_flat, c1b, c2w_flat, c2b, lnfg2, lnfb2)
    return out2d.reshape(B, L, H)


# ===================== pure-JAX reference (faithful to the PyTorch module) =====================
def _layer_norm_ref(x, g, b, eps=EPS):
    mean = jnp.mean(x, axis=-1, keepdims=True)
    var = jnp.sum((x - mean) ** 2, axis=-1, keepdims=True) / (x.shape[-1] - 1)
    return g * (x - mean) / (jnp.sqrt(var) + eps) + b


def _conv1d_k3_both_ref(x, w, bias):
    # x: (B, L, Cin); w: (3, Cin, Cout)  [w[k,i,o] == torch Conv1d weight[o,i,k]]
    bsz, seq, cin = x.shape
    cout = w.shape[-1]
    zeros = jnp.zeros((bsz, 1, cin), dtype=x.dtype)
    x_prev = jnp.concatenate([zeros, x[:, :seq - 1, :]], axis=1)
    x_next = jnp.concatenate([x[:, 1:, :], zeros], axis=1)
    out = (jnp.dot(x_prev.reshape(bsz * seq, cin), w[0], preferred_element_type=jnp.float32)
           + jnp.dot(x.reshape(bsz * seq, cin), w[1], preferred_element_type=jnp.float32)
           + jnp.dot(x_next.reshape(bsz * seq, cin), w[2], preferred_element_type=jnp.float32))
    return out.reshape(bsz, seq, cout) + bias


def _encoder_layer_ref(x, maskf, ln1g, ln1b, wq, wk, wv, wo,
                       ln2g, ln2b, c1w, c1b, c2w, c2b):
    bsz, seq, hid = x.shape
    dk = DK // NUM_HEADS
    dv = DV // NUM_HEADS
    scale = dk ** -0.5

    xn = _layer_norm_ref(x, ln1g, ln1b)
    xn2 = xn.reshape(bsz * seq, hid)
    q = jnp.dot(xn2, wq, preferred_element_type=jnp.float32).reshape(bsz, seq, DK)
    k = jnp.dot(xn2, wk, preferred_element_type=jnp.float32).reshape(bsz, seq, DK)
    v = jnp.dot(xn2, wv, preferred_element_type=jnp.float32).reshape(bsz, seq, DV)

    attn = jnp.zeros((bsz, seq, hid), dtype=jnp.float32)
    for h in range(NUM_HEADS):
        qh = q[:, :, h * dk:(h + 1) * dk] * scale
        kh = k[:, :, h * dk:(h + 1) * dk]
        vh = v[:, :, h * dv:(h + 1) * dv]
        logits = jnp.einsum('bqd,bkd->bqk', qh, kh, preferred_element_type=jnp.float32)
        logits = jnp.where(maskf > 0, -1e18, logits)           # masked_fill
        m = jnp.max(logits, axis=-1, keepdims=True)
        e = jnp.exp(logits - m)
        p = e / jnp.sum(e, axis=-1, keepdims=True)
        ctx = jnp.einsum('bqk,bkd->bqd', p, vh, preferred_element_type=jnp.float32)
        attn = attn + jnp.dot(ctx.reshape(bsz * seq, dv),
                              wo[h * dv:(h + 1) * dv, :],
                              preferred_element_type=jnp.float32).reshape(bsz, seq, hid)
    x = x + attn

    xn = _layer_norm_ref(x, ln2g, ln2b)
    ff = jnp.maximum(_conv1d_k3_both_ref(xn, c1w, c1b), 0.0)
    ff = _conv1d_k3_both_ref(ff, c2w, c2b)
    return x + ff


def encoder_reference(inputs, maskf, params):
    (w_emb, timing, ln1g, ln1b, wq, wk, wv, wo,
     ln2g, ln2b, c1w, c1b, c2w, c2b, lnfg, lnfb) = params
    x = jnp.dot(inputs.reshape(B * L, E), w_emb,
                preferred_element_type=jnp.float32).reshape(B, L, H) + timing
    for l in range(NL):
        x = _encoder_layer_ref(x, maskf, ln1g[l], ln1b[l], wq[l], wk[l], wv[l], wo[l],
                               ln2g[l], ln2b[l], c1w[l], c1b[l], c2w[l], c2b[l])
    return _layer_norm_ref(x, lnfg, lnfb)


# ===================== deterministic parameter / input construction =====================
def gen_timing_signal(length, channels, min_timescale=1.0, max_timescale=1.0e4):
    position = np.arange(length, dtype=np.float64)
    num_timescales = channels // 2
    log_timescale_increment = math.log(max_timescale / min_timescale) / max(num_timescales - 1, 1)
    inv_timescales = min_timescale * np.exp(
        np.arange(num_timescales, dtype=np.float64) * -log_timescale_increment)
    scaled_time = position[:, None] * inv_timescales[None, :]
    signal = np.concatenate([np.sin(scaled_time), np.cos(scaled_time)], axis=1)
    signal = np.pad(signal, [[0, 0], [0, channels % 2]])
    return jnp.asarray(signal, dtype=jnp.float32)   # (length, channels)


if __name__ == "__main__":
    key = jax.random.PRNGKey(0)
    ks = jax.random.split(key, 12)

    inputs = jax.random.normal(ks[0], (B, L, E), dtype=jnp.float32)
    # attention padding mask [B, 1, L]; 1.0 means "masked" (PAD key position)
    maskf = jnp.array([[0, 0, 0, 0, 0, 0, 0, 0],
                       [0, 0, 0, 0, 0, 0, 1, 1]], dtype=jnp.float32).reshape(B, 1, L)

    w_emb = 0.1 * jax.random.normal(ks[1], (E, H), dtype=jnp.float32)
    wq = 0.1 * jax.random.normal(ks[2], (NL, H, DK), dtype=jnp.float32)
    wk = 0.1 * jax.random.normal(ks[3], (NL, H, DK), dtype=jnp.float32)
    wv = 0.1 * jax.random.normal(ks[4], (NL, H, DV), dtype=jnp.float32)
    wo = 0.1 * jax.random.normal(ks[5], (NL, DV, H), dtype=jnp.float32)
    c1w = 0.1 * jax.random.normal(ks[6], (NL, 3, H, FF), dtype=jnp.float32)
    c1b = 0.1 * jax.random.normal(ks[7], (NL, 1, FF), dtype=jnp.float32)
    c2w = 0.1 * jax.random.normal(ks[8], (NL, 3, FF, H), dtype=jnp.float32)
    c2b = 0.1 * jax.random.normal(ks[9], (NL, 1, H), dtype=jnp.float32)

    ln1g = jnp.ones((NL, 1, H), jnp.float32); ln1b = jnp.zeros((NL, 1, H), jnp.float32)
    ln2g = jnp.ones((NL, 1, H), jnp.float32); ln2b = jnp.zeros((NL, 1, H), jnp.float32)
    lnfg = jnp.ones((1, 1, H), jnp.float32);  lnfb = jnp.zeros((1, 1, H), jnp.float32)

    timing = gen_timing_signal(MAX_LEN, H)[:L]   # (L, H)

    params = (w_emb, timing, ln1g, ln1b, wq, wk, wv, wo,
              ln2g, ln2b, c1w, c1b, c2w, c2b, lnfg, lnfb)

    out = encoder_forward(inputs, maskf, params)
    out = jax.block_until_ready(out)

    ref = encoder_reference(inputs, maskf, params)
    np.testing.assert_allclose(np.asarray(out), np.asarray(ref), rtol=2e-2, atol=2e-2)

    print("KERNEL_OK")
</pallas_src>

<mosaic_0001>
module attributes {stable_mosaic.version = 11 : i64} {
  func.func @encoder_kernel(%arg0: memref<16x32xf32, #tpu.memory_space<vmem>>, %arg1: memref<2x1x8xf32, #tpu.memory_space<vmem>>, %arg2: memref<32x32xf32, #tpu.memory_space<vmem>>, %arg3: memref<16x32xf32, #tpu.memory_space<vmem>>, %arg4: memref<2x1x32xf32, #tpu.memory_space<vmem>>, %arg5: memref<2x1x32xf32, #tpu.memory_space<vmem>>, %arg6: memref<2x32x96xf32, #tpu.memory_space<vmem>>, %arg7: memref<2x32x32xf32, #tpu.memory_space<vmem>>, %arg8: memref<2x1x32xf32, #tpu.memory_space<vmem>>, %arg9: memref<2x1x32xf32, #tpu.memory_space<vmem>>, %arg10: memref<2x96x64xf32, #tpu.memory_space<vmem>>, %arg11: memref<2x1x64xf32, #tpu.memory_space<vmem>>, %arg12: memref<2x192x32xf32, #tpu.memory_space<vmem>>, %arg13: memref<2x1x32xf32, #tpu.memory_space<vmem>>, %arg14: memref<1x32xf32, #tpu.memory_space<vmem>>, %arg15: memref<1x32xf32, #tpu.memory_space<vmem>>, %arg16: memref<16x32xf32, #tpu.memory_space<vmem>>) attributes {dimension_semantics = [], scalar_prefetch = 0 : i64, scratch_operands = 0 : i64, tpu.core_type = #tpu.core_type<tc>} {
    %c0 = arith.constant 0 : index
    %c0_0 = arith.constant 0 : index
    %0 = vector.load %arg0[%c0, %c0_0] : memref<16x32xf32, #tpu.memory_space<vmem>>, vector<16x32xf32>
    %c0_1 = arith.constant 0 : index
    %c0_2 = arith.constant 0 : index
    %1 = vector.load %arg2[%c0_1, %c0_2] : memref<32x32xf32, #tpu.memory_space<vmem>>, vector<32x32xf32>
    %cst = arith.constant dense<0.000000e+00> : vector<16x32xf32>
    %2 = tpu.matmul %0, %1, %cst {dimension_numbers = #tpu.dot_dimension_numbers<[1], [0], [0], [1], [0, 0, 1, 1], [], []>} : vector<16x32xf32>, vector<32x32xf32>, vector<16x32xf32> -> vector<16x32xf32>
    %c0_3 = arith.constant 0 : index
    %c0_4 = arith.constant 0 : index
    %3 = vector.load %arg3[%c0_3, %c0_4] : memref<16x32xf32, #tpu.memory_space<vmem>>, vector<16x32xf32>
    %4 = arith.addf %2, %3 : vector<16x32xf32>
    %c0_5 = arith.constant 0 : index
    %c0_6 = arith.constant 0 : index
    %c0_7 = arith.constant 0 : index
    %5 = vector.load %arg1[%c0_5, %c0_6, %c0_7] : memref<2x1x8xf32, #tpu.memory_space<vmem>>, vector<2x1x8xf32>
    %6 = tpu.iota {dimensions = array<i32: 0>} : vector<16x1xi32>
    %c8_i32 = arith.constant 8 : i32
    %c0_i32 = arith.constant 0 : i32
    %7 = arith.cmpi eq, %c8_i32, %c0_i32 : i32
    %c1_i32 = arith.constant 1 : i32
    %8 = arith.select %7, %c1_i32, %c8_i32 : i32
    %9 = vector.broadcast %8 : i32 to vector<16x1xi32>
    %10 = arith.remsi %6, %9 : vector<16x1xi32>
    %c0_i32_8 = arith.constant 0 : i32
    %11 = vector.broadcast %c0_i32_8 : i32 to vector<16x1xi32>
    %12 = arith.cmpi ne, %10, %11 : vector<16x1xi32>
    %c0_i32_9 = arith.constant 0 : i32
    %13 = vector.broadcast %c0_i32_9 : i32 to vector<16x1xi32>
    %14 = arith.cmpi slt, %10, %13 : vector<16x1xi32>
    %c0_i32_10 = arith.constant 0 : i32
    %15 = arith.cmpi slt, %8, %c0_i32_10 : i32
    %16 = vector.broadcast %15 : i1 to vector<16x1xi1>
    %17 = vector.broadcast %16 : vector<16x1xi1> to vector<16x1xi1>
    %18 = arith.xori %14, %17 : vector<16x1xi1>
    %19 = arith.andi %18, %12 : vector<16x1xi1>
    %20 = vector.broadcast %8 : i32 to vector<16x1xi32>
    %21 = arith.addi %10, %20 : vector<16x1xi32>
    %22 = arith.select %19, %21, %10 : vector<16x1xi1>, vector<16x1xi32>
    %c0_i32_11 = arith.constant 0 : i32
    %23 = vector.broadcast %c0_i32_11 : i32 to vector<16x1xi32>
    %24 = arith.cmpi ne, %22, %23 : vector<16x1xi32>
    %c8_i32_12 = arith.constant 8 : i32
    %c0_i32_13 = arith.constant 0 : i32
    %25 = arith.cmpi eq, %c8_i32_12, %c0_i32_13 : i32
    %c1_i32_14 = arith.constant 1 : i32
    %26 = arith.select %25, %c1_i32_14, %c8_i32_12 : i32
    %27 = vector.broadcast %26 : i32 to vector<16x1xi32>
    %28 = arith.remsi %6, %27 : vector<16x1xi32>
    %c0_i32_15 = arith.constant 0 : i32
    %29 = vector.broadcast %c0_i32_15 : i32 to vector<16x1xi32>
    %30 = arith.cmpi ne, %28, %29 : vector<16x1xi32>
    %c0_i32_16 = arith.constant 0 : i32
    %31 = vector.broadcast %c0_i32_16 : i32 to vector<16x1xi32>
    %32 = arith.cmpi slt, %28, %31 : vector<16x1xi32>
    %c0_i32_17 = arith.constant 0 : i32
    %33 = arith.cmpi slt, %26, %c0_i32_17 : i32
    %34 = vector.broadcast %33 : i1 to vector<16x1xi1>
    %35 = vector.broadcast %34 : vector<16x1xi1> to vector<16x1xi1>
    %36 = arith.xori %32, %35 : vector<16x1xi1>
    %37 = arith.andi %36, %30 : vector<16x1xi1>
    %38 = vector.broadcast %26 : i32 to vector<16x1xi32>
    %39 = arith.addi %28, %38 : vector<16x1xi32>
    %40 = arith.select %37, %39, %28 : vector<16x1xi1>, vector<16x1xi32>
    %c7_i32 = arith.constant 7 : i32
    %41 = vector.broadcast %c7_i32 : i32 to vector<16x1xi32>
    %42 = arith.cmpi ne, %40, %41 : vector<16x1xi32>
    %c0_18 = arith.constant 0 : index
    %c0_19 = arith.constant 0 : index
    %c0_20 = arith.constant 0 : index
    %43 = vector.load %arg4[%c0_18, %c0_19, %c0_20] : memref<2x1x32xf32, #tpu.memory_space<vmem>>, vector<1x1x32xf32>
    %44 = vector.shape_cast %43 : vector<1x1x32xf32> to vector<1x32xf32>
    %c0_21 = arith.constant 0 : index
    %c0_22 = arith.constant 0 : index
    %c0_23 = arith.constant 0 : index
    %45 = vector.load %arg5[%c0_21, %c0_22, %c0_23] : memref<2x1x32xf32, #tpu.memory_space<vmem>>, vector<1x1x32xf32>
    %46 = vector.shape_cast %45 : vector<1x1x32xf32> to vector<1x32xf32>
    %cst_24 = arith.constant dense<0.000000e+00> : vector<16xf32>
    %47 = vector.multi_reduction <add>, %4, %cst_24 [1] : vector<16x32xf32> to vector<16xf32>
    %48 = vector.shape_cast %47 : vector<16xf32> to vector<16x1xf32>
    %cst_25 = arith.constant 3.200000e+01 : f32
    %49 = vector.broadcast %cst_25 : f32 to vector<16x1xf32>
    %50 = arith.divf %48, %49 : vector<16x1xf32>
    %51 = vector.broadcast %50 : vector<16x1xf32> to vector<16x32xf32>
    %52 = arith.subf %4, %51 : vector<16x32xf32>
    %53 = arith.mulf %52, %52 : vector<16x32xf32>
    %cst_26 = arith.constant dense<0.000000e+00> : vector<16xf32>
    %54 = vector.multi_reduction <add>, %53, %cst_26 [1] : vector<16x32xf32> to vector<16xf32>
    %55 = vector.shape_cast %54 : vector<16xf32> to vector<16x1xf32>
    %cst_27 = arith.constant 0.0322580636 : f32
    %56 = vector.broadcast %cst_27 : f32 to vector<16x1xf32>
    %57 = arith.mulf %55, %56 : vector<16x1xf32>
    %58 = math.sqrt %57 : vector<16x1xf32>
    %cst_28 = arith.constant 9.99999997E-7 : f32
    %59 = vector.broadcast %cst_28 : f32 to vector<16x1xf32>
    %60 = arith.addf %58, %59 : vector<16x1xf32>
    %61 = tpu.reciprocal %60 {approx = true} : vector<16x1xf32> -> vector<16x1xf32>
    %62 = vector.broadcast %50 : vector<16x1xf32> to vector<16x32xf32>
    %63 = arith.subf %4, %62 : vector<16x32xf32>
    %64 = vector.broadcast %44 : vector<1x32xf32> to vector<16x32xf32>
    %65 = arith.mulf %64, %63 : vector<16x32xf32>
    %66 = vector.broadcast %61 : vector<16x1xf32> to vector<16x32xf32>
    %67 = arith.mulf %65, %66 : vector<16x32xf32>
    %68 = vector.broadcast %46 : vector<1x32xf32> to vector<16x32xf32>
    %69 = arith.addf %67, %68 : vector<16x32xf32>
    %c0_29 = arith.constant 0 : index
    %c0_30 = arith.constant 0 : index
    %c0_31 = arith.constant 0 : index
    %70 = vector.load %arg6[%c0_29, %c0_30, %c0_31] : memref<2x32x96xf32, #tpu.memory_space<vmem>>, vector<1x32x96xf32>
    %71 = vector.shape_cast %70 : vector<1x32x96xf32> to vector<32x96xf32>
    %cst_32 = arith.constant dense<0.000000e+00> : vector<16x96xf32>
    %72 = tpu.matmul %69, %71, %cst_32 {dimension_numbers = #tpu.dot_dimension_numbers<[1], [0], [0], [1], [0, 0, 1, 1], [], []>} : vector<16x32xf32>, vector<32x96xf32>, vector<16x96xf32> -> vector<16x96xf32>
    %73 = vector.shape_cast %72 : vector<16x96xf32> to vector<2x8x96xf32>
    %74 = vector.extract_strided_slice %73 {offsets = [0, 0, 0], sizes = [2, 8, 8], strides = [1, 1, 1]} : vector<2x8x96xf32> to vector<2x8x8xf32>
    %75 = vector.extract_strided_slice %73 {offsets = [0, 0, 32], sizes = [2, 8, 8], strides = [1, 1, 1]} : vector<2x8x96xf32> to vector<2x8x8xf32>
    %76 = vector.extract_strided_slice %73 {offsets = [0, 0, 64], sizes = [2, 8, 8], strides = [1, 1, 1]} : vector<2x8x96xf32> to vector<2x8x8xf32>
    "tpu.trace_start"() <{level = 10 : i32, message = "bqd,bkd->bqk"}> : () -> ()
    %cst_33 = arith.constant dense<0.000000e+00> : vector<2x8x8xf32>
    %77 = tpu.matmul %74, %75, %cst_33 {dimension_numbers = #tpu.dot_dimension_numbers<[2], [2], [1], [1], [0, 0, 0, 1, 1, 1], [0], [0]>} : vector<2x8x8xf32>, vector<2x8x8xf32>, vector<2x8x8xf32> -> vector<2x8x8xf32>
    "tpu.trace_stop"() : () -> ()
    %78 = vector.broadcast %5 : vector<2x1x8xf32> to vector<2x8x8xf32>
    %79 = arith.addf %77, %78 : vector<2x8x8xf32>
    %cst_34 = arith.constant dense<0xFF800000> : vector<2x8xf32>
    %80 = vector.multi_reduction <maximumf>, %79, %cst_34 [2] : vector<2x8x8xf32> to vector<2x8xf32>
    %81 = vector.shape_cast %80 : vector<2x8xf32> to vector<2x8x1xf32>
    %82 = vector.broadcast %81 : vector<2x8x1xf32> to vector<2x8x8xf32>
    %83 = arith.subf %79, %82 : vector<2x8x8xf32>
    %84 = math.exp %83 : vector<2x8x8xf32>
    %cst_35 = arith.constant dense<0.000000e+00> : vector<2x8xf32>
    %85 = vector.multi_reduction <add>, %84, %cst_35 [2] : vector<2x8x8xf32> to vector<2x8xf32>
    %86 = vector.shape_cast %85 : vector<2x8xf32> to vector<2x8x1xf32>
    %87 = tpu.reciprocal %86 {approx = true} : vector<2x8x1xf32> -> vector<2x8x1xf32>
    %88 = vector.broadcast %87 : vector<2x8x1xf32> to vector<2x8x8xf32>
    %89 = arith.mulf %84, %88 : vector<2x8x8xf32>
    "tpu.trace_start"() <{level = 10 : i32, message = "bqk,bkd->bqd"}> : () -> ()
    %cst_36 = arith.constant dense<0.000000e+00> : vector<2x8x8xf32>
    %90 = tpu.matmul %89, %76, %cst_36 {dimension_numbers = #tpu.dot_dimension_numbers<[2], [1], [1], [2], [0, 0, 0, 1, 1, 2], [0], [0]>} : vector<2x8x8xf32>, vector<2x8x8xf32>, vector<2x8x8xf32> -> vector<2x8x8xf32>
    "tpu.trace_stop"() : () -> ()
    %91 = vector.extract_strided_slice %73 {offsets = [0, 0, 8], sizes = [2, 8, 8], strides = [1, 1, 1]} : vector<2x8x96xf32> to vector<2x8x8xf32>
    %92 = vector.extract_strided_slice %73 {offsets = [0, 0, 40], sizes = [2, 8, 8], strides = [1, 1, 1]} : vector<2x8x96xf32> to vector<2x8x8xf32>
    %93 = vector.extract_strided_slice %73 {offsets = [0, 0, 72], sizes = [2, 8, 8], strides = [1, 1, 1]} : vector<2x8x96xf32> to vector<2x8x8xf32>
    "tpu.trace_start"() <{level = 10 : i32, message = "bqd,bkd->bqk"}> : () -> ()
    %cst_37 = arith.constant dense<0.000000e+00> : vector<2x8x8xf32>
    %94 = tpu.matmul %91, %92, %cst_37 {dimension_numbers = #tpu.dot_dimension_numbers<[2], [2], [1], [1], [0, 0, 0, 1, 1, 1], [0], [0]>} : vector<2x8x8xf32>, vector<2x8x8xf32>, vector<2x8x8xf32> -> vector<2x8x8xf32>
    "tpu.trace_stop"() : () -> ()
    %95 = vector.broadcast %5 : vector<2x1x8xf32> to vector<2x8x8xf32>
    %96 = arith.addf %94, %95 : vector<2x8x8xf32>
    %cst_38 = arith.constant dense<0xFF800000> : vector<2x8xf32>
    %97 = vector.multi_reduction <maximumf>, %96, %cst_38 [2] : vector<2x8x8xf32> to vector<2x8xf32>
    %98 = vector.shape_cast %97 : vector<2x8xf32> to vector<2x8x1xf32>
    %99 = vector.broadcast %98 : vector<2x8x1xf32> to vector<2x8x8xf32>
    %100 = arith.subf %96, %99 : vector<2x8x8xf32>
    %101 = math.exp %100 : vector<2x8x8xf32>
    %cst_39 = arith.constant dense<0.000000e+00> : vector<2x8xf32>
    %102 = vector.multi_reduction <add>, %101, %cst_39 [2] : vector<2x8x8xf32> to vector<2x8xf32>
    %103 = vector.shape_cast %102 : vector<2x8xf32> to vector<2x8x1xf32>
    %104 = tpu.reciprocal %103 {approx = true} : vector<2x8x1xf32> -> vector<2x8x1xf32>
    %105 = vector.broadcast %104 : vector<2x8x1xf32> to vector<2x8x8xf32>
    %106 = arith.mulf %101, %105 : vector<2x8x8xf32>
    "tpu.trace_start"() <{level = 10 : i32, message = "bqk,bkd->bqd"}> : () -> ()
    %cst_40 = arith.constant dense<0.000000e+00> : vector<2x8x8xf32>
    %107 = tpu.matmul %106, %93, %cst_40 {dimension_numbers = #tpu.dot_dimension_numbers<[2], [1], [1], [2], [0, 0, 0, 1, 1, 2], [0], [0]>} : vector<2x8x8xf32>, vector<2x8x8xf32>, vector<2x8x8xf32> -> vector<2x8x8xf32>
    "tpu.trace_stop"() : () -> ()
    %108 = vector.extract_strided_slice %73 {offsets = [0, 0, 16], sizes = [2, 8, 8], strides = [1, 1, 1]} : vector<2x8x96xf32> to vector<2x8x8xf32>
    %109 = vector.extract_strided_slice %73 {offsets = [0, 0, 48], sizes = [2, 8, 8], strides = [1, 1, 1]} : vector<2x8x96xf32> to vector<2x8x8xf32>
    %110 = vector.extract_strided_slice %73 {offsets = [0, 0, 80], sizes = [2, 8, 8], strides = [1, 1, 1]} : vector<2x8x96xf32> to vector<2x8x8xf32>
    "tpu.trace_start"() <{level = 10 : i32, message = "bqd,bkd->bqk"}> : () -> ()
    %cst_41 = arith.constant dense<0.000000e+00> : vector<2x8x8xf32>
    %111 = tpu.matmul %108, %109, %cst_41 {dimension_numbers = #tpu.dot_dimension_numbers<[2], [2], [1], [1], [0, 0, 0, 1, 1, 1], [0], [0]>} : vector<2x8x8xf32>, vector<2x8x8xf32>, vector<2x8x8xf32> -> vector<2x8x8xf32>
    "tpu.trace_stop"() : () -> ()
    %112 = vector.broadcast %5 : vector<2x1x8xf32> to vector<2x8x8xf32>
    %113 = arith.addf %111, %112 : vector<2x8x8xf32>
    %cst_42 = arith.constant dense<0xFF800000> : vector<2x8xf32>
    %114 = vector.multi_reduction <maximumf>, %113, %cst_42 [2] : vector<2x8x8xf32> to vector<2x8xf32>
    %115 = vector.shape_cast %114 : vector<2x8xf32> to vector<2x8x1xf32>
    %116 = vector.broadcast %115 : vector<2x8x1xf32> to vector<2x8x8xf32>
    %117 = arith.subf %113, %116 : vector<2x8x8xf32>
    %118 = math.exp %117 : vector<2x8x8xf32>
    %cst_43 = arith.constant dense<0.000000e+00> : vector<2x8xf32>
    %119 = vector.multi_reduction <add>, %118, %cst_43 [2] : vector<2x8x8xf32> to vector<2x8xf32>
    %120 = vector.shape_cast %119 : vector<2x8xf32> to vector<2x8x1xf32>
    %121 = tpu.reciprocal %120 {approx = true} : vector<2x8x1xf32> -> vector<2x8x1xf32>
    %122 = vector.broadcast %121 : vector<2x8x1xf32> to vector<2x8x8xf32>
    %123 = arith.mulf %118, %122 : vector<2x8x8xf32>
    "tpu.trace_start"() <{level = 10 : i32, message = "bqk,bkd->bqd"}> : () -> ()
    %cst_44 = arith.constant dense<0.000000e+00> : vector<2x8x8xf32>
    %124 = tpu.matmul %123, %110, %cst_44 {dimension_numbers = #tpu.dot_dimension_numbers<[2], [1], [1], [2], [0, 0, 0, 1, 1, 2], [0], [0]>} : vector<2x8x8xf32>, vector<2x8x8xf32>, vector<2x8x8xf32> -> vector<2x8x8xf32>
    "tpu.trace_stop"() : () -> ()
    %125 = vector.extract_strided_slice %73 {offsets = [0, 0, 24], sizes = [2, 8, 8], strides = [1, 1, 1]} : vector<2x8x96xf32> to vector<2x8x8xf32>
    %126 = vector.extract_strided_slice %73 {offsets = [0, 0, 56], sizes = [2, 8, 8], strides = [1, 1, 1]} : vector<2x8x96xf32> to vector<2x8x8xf32>
    %127 = vector.extract_strided_slice %73 {offsets = [0, 0, 88], sizes = [2, 8, 8], strides = [1, 1, 1]} : vector<2x8x96xf32> to vector<2x8x8xf32>
    "tpu.trace_start"() <{level = 10 : i32, message = "bqd,bkd->bqk"}> : () -> ()
    %cst_45 = arith.constant dense<0.000000e+00> : vector<2x8x8xf32>
    %128 = tpu.matmul %125, %126, %cst_45 {dimension_numbers = #tpu.dot_dimension_numbers<[2], [2], [1], [1], [0, 0, 0, 1, 1, 1], [0], [0]>} : vector<2x8x8xf32>, vector<2x8x8xf32>, vector<2x8x8xf32> -> vector<2x8x8xf32>
    "tpu.trace_stop"() : () -> ()
    %129 = vector.broadcast %5 : vector<2x1x8xf32> to vector<2x8x8xf32>
    %130 = arith.addf %128, %129 : vector<2x8x8xf32>
    %cst_46 = arith.constant dense<0xFF800000> : vector<2x8xf32>
    %131 = vector.multi_reduction <maximumf>, %130, %cst_46 [2] : vector<2x8x8xf32> to vector<2x8xf32>
    %132 = vector.shape_cast %131 : vector<2x8xf32> to vector<2x8x1xf32>
    %133 = vector.broadcast %132 : vector<2x8x1xf32> to vector<2x8x8xf32>
    %134 = arith.subf %130, %133 : vector<2x8x8xf32>
    %135 = math.exp %134 : vector<2x8x8xf32>
    %cst_47 = arith.constant dense<0.000000e+00> : vector<2x8xf32>
    %136 = vector.multi_reduction <add>, %135, %cst_47 [2] : vector<2x8x8xf32> to vector<2x8xf32>
    %137 = vector.shape_cast %136 : vector<2x8xf32> to vector<2x8x1xf32>
    %138 = tpu.reciprocal %137 {approx = true} : vector<2x8x1xf32> -> vector<2x8x1xf32>
    %139 = vector.broadcast %138 : vector<2x8x1xf32> to vector<2x8x8xf32>
    %140 = arith.mulf %135, %139 : vector<2x8x8xf32>
    "tpu.trace_start"() <{level = 10 : i32, message = "bqk,bkd->bqd"}> : () -> ()
    %cst_48 = arith.constant dense<0.000000e+00> : vector<2x8x8xf32>
    %141 = tpu.matmul %140, %127, %cst_48 {dimension_numbers = #tpu.dot_dimension_numbers<[2], [1], [1], [2], [0, 0, 0, 1, 1, 2], [0], [0]>} : vector<2x8x8xf32>, vector<2x8x8xf32>, vector<2x8x8xf32> -> vector<2x8x8xf32>
    "tpu.trace_stop"() : () -> ()
    %142 = tpu.concatenate %90, %107, %124, %141 in 2 : vector<2x8x8xf32>, vector<2x8x8xf32>, vector<2x8x8xf32>, vector<2x8x8xf32> -> vector<2x8x32xf32>
    %143 = vector.shape_cast %142 : vector<2x8x32xf32> to vector<16x32xf32>
    %c0_49 = arith.constant 0 : index
    %c0_50 = arith.constant 0 : index
    %c0_51 = arith.constant 0 : index
    %144 = vector.load %arg7[%c0_49, %c0_50, %c0_51] : memref<2x32x32xf32, #tpu.memory_space<vmem>>, vector<1x32x32xf32>
    %145 = vector.shape_cast %144 : vector<1x32x32xf32> to vector<32x32xf32>
    %cst_52 = arith.constant dense<0.000000e+00> : vector<16x32xf32>
    %146 = tpu.matmul %143, %145, %cst_52 {dimension_numbers = #tpu.dot_dimension_numbers<[1], [0], [0], [1], [0, 0, 1, 1], [], []>} : vector<16x32xf32>, vector<32x32xf32>, vector<16x32xf32> -> vector<16x32xf32>
    %147 = arith.addf %4, %146 : vector<16x32xf32>
    %c0_53 = arith.constant 0 : index
    %c0_54 = arith.constant 0 : index
    %c0_55 = arith.constant 0 : index
    %148 = vector.load %arg8[%c0_53, %c0_54, %c0_55] : memref<2x1x32xf32, #tpu.memory_space<vmem>>, vector<1x1x32xf32>
    %149 = vector.shape_cast %148 : vector<1x1x32xf32> to vector<1x32xf32>
    %c0_56 = arith.constant 0 : index
    %c0_57 = arith.constant 0 : index
    %c0_58 = arith.constant 0 : index
    %150 = vector.load %arg9[%c0_56, %c0_57, %c0_58] : memref<2x1x32xf32, #tpu.memory_space<vmem>>, vector<1x1x32xf32>
    %151 = vector.shape_cast %150 : vector<1x1x32xf32> to vector<1x32xf32>
    %cst_59 = arith.constant dense<0.000000e+00> : vector<16xf32>
    %152 = vector.multi_reduction <add>, %147, %cst_59 [1] : vector<16x32xf32> to vector<16xf32>
    %153 = vector.shape_cast %152 : vector<16xf32> to vector<16x1xf32>
    %cst_60 = arith.constant 3.200000e+01 : f32
    %154 = vector.broadcast %cst_60 : f32 to vector<16x1xf32>
    %155 = arith.divf %153, %154 : vector<16x1xf32>
    %156 = vector.broadcast %155 : vector<16x1xf32> to vector<16x32xf32>
    %157 = arith.subf %147, %156 : vector<16x32xf32>
    %158 = arith.mulf %157, %157 : vector<16x32xf32>
    %cst_61 = arith.constant dense<0.000000e+00> : vector<16xf32>
    %159 = vector.multi_reduction <add>, %158, %cst_61 [1] : vector<16x32xf32> to vector<16xf32>
    %160 = vector.shape_cast %159 : vector<16xf32> to vector<16x1xf32>
    %cst_62 = arith.constant 0.0322580636 : f32
    %161 = vector.broadcast %cst_62 : f32 to vector<16x1xf32>
    %162 = arith.mulf %160, %161 : vector<16x1xf32>
    %163 = math.sqrt %162 : vector<16x1xf32>
    %cst_63 = arith.constant 9.99999997E-7 : f32
    %164 = vector.broadcast %cst_63 : f32 to vector<16x1xf32>
    %165 = arith.addf %163, %164 : vector<16x1xf32>
    %166 = tpu.reciprocal %165 {approx = true} : vector<16x1xf32> -> vector<16x1xf32>
    %167 = vector.broadcast %155 : vector<16x1xf32> to vector<16x32xf32>
    %168 = arith.subf %147, %167 : vector<16x32xf32>
    %169 = vector.broadcast %149 : vector<1x32xf32> to vector<16x32xf32>
    %170 = arith.mulf %169, %168 : vector<16x32xf32>
    %171 = vector.broadcast %166 : vector<16x1xf32> to vector<16x32xf32>
    %172 = arith.mulf %170, %171 : vector<16x32xf32>
    %173 = vector.broadcast %151 : vector<1x32xf32> to vector<16x32xf32>
    %174 = arith.addf %172, %173 : vector<16x32xf32>
    %c0_64 = arith.constant 0 : index
    %c0_65 = arith.constant 0 : index
    %c0_66 = arith.constant 0 : index
    %175 = vector.load %arg10[%c0_64, %c0_65, %c0_66] : memref<2x96x64xf32, #tpu.memory_space<vmem>>, vector<1x96x64xf32>
    %176 = vector.shape_cast %175 : vector<1x96x64xf32> to vector<96x64xf32>
    %c0_67 = arith.constant 0 : index
    %c0_68 = arith.constant 0 : index
    %c0_69 = arith.constant 0 : index
    %177 = vector.load %arg11[%c0_67, %c0_68, %c0_69] : memref<2x1x64xf32, #tpu.memory_space<vmem>>, vector<1x1x64xf32>
    %178 = vector.shape_cast %177 : vector<1x1x64xf32> to vector<1x64xf32>
    %c1_i32_70 = arith.constant 1 : i32
    %179 = tpu.dynamic_rotate %174 by %c1_i32_70 dim 0 : vector<16x32xf32>, i32 -> vector<16x32xf32>
    %cst_71 = arith.constant 0.000000e+00 : f32
    %180 = vector.shape_cast %24 : vector<16x1xi1> to vector<16x1xi1>
    %181 = vector.broadcast %180 : vector<16x1xi1> to vector<16x32xi1>
    %182 = vector.broadcast %cst_71 : f32 to vector<16x32xf32>
    %183 = arith.select %181, %179, %182 : vector<16x32xi1>, vector<16x32xf32>
    %c15_i32 = arith.constant 15 : i32
    %184 = tpu.dynamic_rotate %174 by %c15_i32 dim 0 : vector<16x32xf32>, i32 -> vector<16x32xf32>
    %cst_72 = arith.constant 0.000000e+00 : f32
    %185 = vector.shape_cast %42 : vector<16x1xi1> to vector<16x1xi1>
    %186 = vector.broadcast %185 : vector<16x1xi1> to vector<16x32xi1>
    %187 = vector.broadcast %cst_72 : f32 to vector<16x32xf32>
    %188 = arith.select %186, %184, %187 : vector<16x32xi1>, vector<16x32xf32>
    %189 = tpu.concatenate %183, %174, %188 in 1 : vector<16x32xf32>, vector<16x32xf32>, vector<16x32xf32> -> vector<16x96xf32>
    %cst_73 = arith.constant dense<0.000000e+00> : vector<16x64xf32>
    %190 = tpu.matmul %189, %176, %cst_73 {dimension_numbers = #tpu.dot_dimension_numbers<[1], [0], [0], [1], [0, 0, 1, 1], [], []>} : vector<16x96xf32>, vector<96x64xf32>, vector<16x64xf32> -> vector<16x64xf32>
    %191 = vector.broadcast %178 : vector<1x64xf32> to vector<16x64xf32>
    %192 = arith.addf %190, %191 : vector<16x64xf32>
    %cst_74 = arith.constant 0.000000e+00 : f32
    %193 = vector.broadcast %cst_74 : f32 to vector<16x64xf32>
    %194 = arith.maximumf %192, %193 : vector<16x64xf32>
    %c0_75 = arith.constant 0 : index
    %c0_76 = arith.constant 0 : index
    %c0_77 = arith.constant 0 : index
    %195 = vector.load %arg12[%c0_75, %c0_76, %c0_77] : memref<2x192x32xf32, #tpu.memory_space<vmem>>, vector<1x192x32xf32>
    %196 = vector.shape_cast %195 : vector<1x192x32xf32> to vector<192x32xf32>
    %c0_78 = arith.constant 0 : index
    %c0_79 = arith.constant 0 : index
    %c0_80 = arith.constant 0 : index
    %197 = vector.load %arg13[%c0_78, %c0_79, %c0_80] : memref<2x1x32xf32, #tpu.memory_space<vmem>>, vector<1x1x32xf32>
    %198 = vector.shape_cast %197 : vector<1x1x32xf32> to vector<1x32xf32>
    %c1_i32_81 = arith.constant 1 : i32
    %199 = tpu.dynamic_rotate %194 by %c1_i32_81 dim 0 : vector<16x64xf32>, i32 -> vector<16x64xf32>
    %cst_82 = arith.constant 0.000000e+00 : f32
    %200 = vector.shape_cast %24 : vector<16x1xi1> to vector<16x1xi1>
    %201 = vector.broadcast %200 : vector<16x1xi1> to vector<16x64xi1>
    %202 = vector.broadcast %cst_82 : f32 to vector<16x64xf32>
    %203 = arith.select %201, %199, %202 : vector<16x64xi1>, vector<16x64xf32>
    %c15_i32_83 = arith.constant 15 : i32
    %204 = tpu.dynamic_rotate %194 by %c15_i32_83 dim 0 : vector<16x64xf32>, i32 -> vector<16x64xf32>
    %cst_84 = arith.constant 0.000000e+00 : f32
    %205 = vector.shape_cast %42 : vector<16x1xi1> to vector<16x1xi1>
    %206 = vector.broadcast %205 : vector<16x1xi1> to vector<16x64xi1>
    %207 = vector.broadcast %cst_84 : f32 to vector<16x64xf32>
    %208 = arith.select %206, %204, %207 : vector<16x64xi1>, vector<16x64xf32>
    %209 = tpu.concatenate %203, %194, %208 in 1 : vector<16x64xf32>, vector<16x64xf32>, vector<16x64xf32> -> vector<16x192xf32>
    %cst_85 = arith.constant dense<0.000000e+00> : vector<16x32xf32>
    %210 = tpu.matmul %209, %196, %cst_85 {dimension_numbers = #tpu.dot_dimension_numbers<[1], [0], [0], [1], [0, 0, 1, 1], [], []>} : vector<16x192xf32>, vector<192x32xf32>, vector<16x32xf32> -> vector<16x32xf32>
    %211 = vector.broadcast %198 : vector<1x32xf32> to vector<16x32xf32>
    %212 = arith.addf %210, %211 : vector<16x32xf32>
    %213 = arith.addf %147, %212 : vector<16x32xf32>
    %c1 = arith.constant 1 : index
    %c0_86 = arith.constant 0 : index
    %c0_87 = arith.constant 0 : index
    %214 = vector.load %arg4[%c1, %c0_86, %c0_87] : memref<2x1x32xf32, #tpu.memory_space<vmem>>, vector<1x1x32xf32>
    %215 = vector.shape_cast %214 : vector<1x1x32xf32> to vector<1x32xf32>
    %c1_88 = arith.constant 1 : index
    %c0_89 = arith.constant 0 : index
    %c0_90 = arith.constant 0 : index
    %216 = vector.load %arg5[%c1_88, %c0_89, %c0_90] : memref<2x1x32xf32, #tpu.memory_space<vmem>>, vector<1x1x32xf32>
    %217 = vector.shape_cast %216 : vector<1x1x32xf32> to vector<1x32xf32>
    %cst_91 = arith.constant dense<0.000000e+00> : vector<16xf32>
    %218 = vector.multi_reduction <add>, %213, %cst_91 [1] : vector<16x32xf32> to vector<16xf32>
    %219 = vector.shape_cast %218 : vector<16xf32> to vector<16x1xf32>
    %cst_92 = arith.constant 3.200000e+01 : f32
    %220 = vector.broadcast %cst_92 : f32 to vector<16x1xf32>
    %221 = arith.divf %219, %220 : vector<16x1xf32>
    %222 = vector.broadcast %221 : vector<16x1xf32> to vector<16x32xf32>
    %223 = arith.subf %213, %222 : vector<16x32xf32>
    %224 = arith.mulf %223, %223 : vector<16x32xf32>
    %cst_93 = arith.constant dense<0.000000e+00> : vector<16xf32>
    %225 = vector.multi_reduction <add>, %224, %cst_93 [1] : vector<16x32xf32> to vector<16xf32>
    %226 = vector.shape_cast %225 : vector<16xf32> to vector<16x1xf32>
    %cst_94 = arith.constant 0.0322580636 : f32
    %227 = vector.broadcast %cst_94 : f32 to vector<16x1xf32>
    %228 = arith.mulf %226, %227 : vector<16x1xf32>
    %229 = math.sqrt %228 : vector<16x1xf32>
    %cst_95 = arith.constant 9.99999997E-7 : f32
    %230 = vector.broadcast %cst_95 : f32 to vector<16x1xf32>
    %231 = arith.addf %229, %230 : vector<16x1xf32>
    %232 = tpu.reciprocal %231 {approx = true} : vector<16x1xf32> -> vector<16x1xf32>
    %233 = vector.broadcast %221 : vector<16x1xf32> to vector<16x32xf32>
    %234 = arith.subf %213, %233 : vector<16x32xf32>
    %235 = vector.broadcast %215 : vector<1x32xf32> to vector<16x32xf32>
    %236 = arith.mulf %235, %234 : vector<16x32xf32>
    %237 = vector.broadcast %232 : vector<16x1xf32> to vector<16x32xf32>
    %238 = arith.mulf %236, %237 : vector<16x32xf32>
    %239 = vector.broadcast %217 : vector<1x32xf32> to vector<16x32xf32>
    %240 = arith.addf %238, %239 : vector<16x32xf32>
    %c1_96 = arith.constant 1 : index
    %c0_97 = arith.constant 0 : index
    %c0_98 = arith.constant 0 : index
    %241 = vector.load %arg6[%c1_96, %c0_97, %c0_98] : memref<2x32x96xf32, #tpu.memory_space<vmem>>, vector<1x32x96xf32>
    %242 = vector.shape_cast %241 : vector<1x32x96xf32> to vector<32x96xf32>
    %cst_99 = arith.constant dense<0.000000e+00> : vector<16x96xf32>
    %243 = tpu.matmul %240, %242, %cst_99 {dimension_numbers = #tpu.dot_dimension_numbers<[1], [0], [0], [1], [0, 0, 1, 1], [], []>} : vector<16x32xf32>, vector<32x96xf32>, vector<16x96xf32> -> vector<16x96xf32>
    %244 = vector.shape_cast %243 : vector<16x96xf32> to vector<2x8x96xf32>
    %245 = vector.extract_strided_slice %244 {offsets = [0, 0, 0], sizes = [2, 8, 8], strides = [1, 1, 1]} : vector<2x8x96xf32> to vector<2x8x8xf32>
    %246 = vector.extract_strided_slice %244 {offsets = [0, 0, 32], sizes = [2, 8, 8], strides = [1, 1, 1]} : vector<2x8x96xf32> to vector<2x8x8xf32>
    %247 = vector.extract_strided_slice %244 {offsets = [0, 0, 64], sizes = [2, 8, 8], strides = [1, 1, 1]} : vector<2x8x96xf32> to vector<2x8x8xf32>
    "tpu.trace_start"() <{level = 10 : i32, message = "bqd,bkd->bqk"}> : () -> ()
    %cst_100 = arith.constant dense<0.000000e+00> : vector<2x8x8xf32>
    %248 = tpu.matmul %245, %246, %cst_100 {dimension_numbers = #tpu.dot_dimension_numbers<[2], [2], [1], [1], [0, 0, 0, 1, 1, 1], [0], [0]>} : vector<2x8x8xf32>, vector<2x8x8xf32>, vector<2x8x8xf32> -> vector<2x8x8xf32>
    "tpu.trace_stop"() : () -> ()
    %249 = vector.broadcast %5 : vector<2x1x8xf32> to vector<2x8x8xf32>
    %250 = arith.addf %248, %249 : vector<2x8x8xf32>
    %cst_101 = arith.constant dense<0xFF800000> : vector<2x8xf32>
    %251 = vector.multi_reduction <maximumf>, %250, %cst_101 [2] : vector<2x8x8xf32> to vector<2x8xf32>
    %252 = vector.shape_cast %251 : vector<2x8xf32> to vector<2x8x1xf32>
    %253 = vector.broadcast %252 : vector<2x8x1xf32> to vector<2x8x8xf32>
    %254 = arith.subf %250, %253 : vector<2x8x8xf32>
    %255 = math.exp %254 : vector<2x8x8xf32>
    %cst_102 = arith.constant dense<0.000000e+00> : vector<2x8xf32>
    %256 = vector.multi_reduction <add>, %255, %cst_102 [2] : vector<2x8x8xf32> to vector<2x8xf32>
    %257 = vector.shape_cast %256 : vector<2x8xf32> to vector<2x8x1xf32>
    %258 = tpu.reciprocal %257 {approx = true} : vector<2x8x1xf32> -> vector<2x8x1xf32>
    %259 = vector.broadcast %258 : vector<2x8x1xf32> to vector<2x8x8xf32>
    %260 = arith.mulf %255, %259 : vector<2x8x8xf32>
    "tpu.trace_start"() <{level = 10 : i32, message = "bqk,bkd->bqd"}> : () -> ()
    %cst_103 = arith.constant dense<0.000000e+00> : vector<2x8x8xf32>
    %261 = tpu.matmul %260, %247, %cst_103 {dimension_numbers = #tpu.dot_dimension_numbers<[2], [1], [1], [2], [0, 0, 0, 1, 1, 2], [0], [0]>} : vector<2x8x8xf32>, vector<2x8x8xf32>, vector<2x8x8xf32> -> vector<2x8x8xf32>
    "tpu.trace_stop"() : () -> ()
    %262 = vector.extract_strided_slice %244 {offsets = [0, 0, 8], sizes = [2, 8, 8], strides = [1, 1, 1]} : vector<2x8x96xf32> to vector<2x8x8xf32>
    %263 = vector.extract_strided_slice %244 {offsets = [0, 0, 40], sizes = [2, 8, 8], strides = [1, 1, 1]} : vector<2x8x96xf32> to vector<2x8x8xf32>
    %264 = vector.extract_strided_slice %244 {offsets = [0, 0, 72], sizes = [2, 8, 8], strides = [1, 1, 1]} : vector<2x8x96xf32> to vector<2x8x8xf32>
    "tpu.trace_start"() <{level = 10 : i32, message = "bqd,bkd->bqk"}> : () -> ()
    %cst_104 = arith.constant dense<0.000000e+00> : vector<2x8x8xf32>
    %265 = tpu.matmul %262, %263, %cst_104 {dimension_numbers = #tpu.dot_dimension_numbers<[2], [2], [1], [1], [0, 0, 0, 1, 1, 1], [0], [0]>} : vector<2x8x8xf32>, vector<2x8x8xf32>, vector<2x8x8xf32> -> vector<2x8x8xf32>
    "tpu.trace_stop"() : () -> ()
    %266 = vector.broadcast %5 : vector<2x1x8xf32> to vector<2x8x8xf32>
    %267 = arith.addf %265, %266 : vector<2x8x8xf32>
    %cst_105 = arith.constant dense<0xFF800000> : vector<2x8xf32>
    %268 = vector.multi_reduction <maximumf>, %267, %cst_105 [2] : vector<2x8x8xf32> to vector<2x8xf32>
    %269 = vector.shape_cast %268 : vector<2x8xf32> to vector<2x8x1xf32>
    %270 = vector.broadcast %269 : vector<2x8x1xf32> to vector<2x8x8xf32>
    %271 = arith.subf %267, %270 : vector<2x8x8xf32>
    %272 = math.exp %271 : vector<2x8x8xf32>
    %cst_106 = arith.constant dense<0.000000e+00> : vector<2x8xf32>
    %273 = vector.multi_reduction <add>, %272, %cst_106 [2] : vector<2x8x8xf32> to vector<2x8xf32>
    %274 = vector.shape_cast %273 : vector<2x8xf32> to vector<2x8x1xf32>
    %275 = tpu.reciprocal %274 {approx = true} : vector<2x8x1xf32> -> vector<2x8x1xf32>
    %276 = vector.broadcast %275 : vector<2x8x1xf32> to vector<2x8x8xf32>
    %277 = arith.mulf %272, %276 : vector<2x8x8xf32>
    "tpu.trace_start"() <{level = 10 : i32, message = "bqk,bkd->bqd"}> : () -> ()
    %cst_107 = arith.constant dense<0.000000e+00> : vector<2x8x8xf32>
    %278 = tpu.matmul %277, %264, %cst_107 {dimension_numbers = #tpu.dot_dimension_numbers<[2], [1], [1], [2], [0, 0, 0, 1, 1, 2], [0], [0]>} : vector<2x8x8xf32>, vector<2x8x8xf32>, vector<2x8x8xf32> -> vector<2x8x8xf32>
    "tpu.trace_stop"() : () -> ()
    %279 = vector.extract_strided_slice %244 {offsets = [0, 0, 16], sizes = [2, 8, 8], strides = [1, 1, 1]} : vector<2x8x96xf32> to vector<2x8x8xf32>
    %280 = vector.extract_strided_slice %244 {offsets = [0, 0, 48], sizes = [2, 8, 8], strides = [1, 1, 1]} : vector<2x8x96xf32> to vector<2x8x8xf32>
    %281 = vector.extract_strided_slice %244 {offsets = [0, 0, 80], sizes = [2, 8, 8], strides = [1, 1, 1]} : vector<2x8x96xf32> to vector<2x8x8xf32>
    "tpu.trace_start"() <{level = 10 : i32, message = "bqd,bkd->bqk"}> : () -> ()
    %cst_108 = arith.constant dense<0.000000e+00> : vector<2x8x8xf32>
    %282 = tpu.matmul %279, %280, %cst_108 {dimension_numbers = #tpu.dot_dimension_numbers<[2], [2], [1], [1], [0, 0, 0, 1, 1, 1], [0], [0]>} : vector<2x8x8xf32>, vector<2x8x8xf32>, vector<2x8x8xf32> -> vector<2x8x8xf32>
    "tpu.trace_stop"() : () -> ()
    %283 = vector.broadcast %5 : vector<2x1x8xf32> to vector<2x8x8xf32>
    %284 = arith.addf %282, %283 : vector<2x8x8xf32>
    %cst_109 = arith.constant dense<0xFF800000> : vector<2x8xf32>
    %285 = vector.multi_reduction <maximumf>, %284, %cst_109 [2] : vector<2x8x8xf32> to vector<2x8xf32>
    %286 = vector.shape_cast %285 : vector<2x8xf32> to vector<2x8x1xf32>
    %287 = vector.broadcast %286 : vector<2x8x1xf32> to vector<2x8x8xf32>
    %288 = arith.subf %284, %287 : vector<2x8x8xf32>
    %289 = math.exp %288 : vector<2x8x8xf32>
    %cst_110 = arith.constant dense<0.000000e+00> : vector<2x8xf32>
    %290 = vector.multi_reduction <add>, %289, %cst_110 [2] : vector<2x8x8xf32> to vector<2x8xf32>
    %291 = vector.shape_cast %290 : vector<2x8xf32> to vector<2x8x1xf32>
    %292 = tpu.reciprocal %291 {approx = true} : vector<2x8x1xf32> -> vector<2x8x1xf32>
    %293 = vector.broadcast %292 : vector<2x8x1xf32> to vector<2x8x8xf32>
    %294 = arith.mulf %289, %293 : vector<2x8x8xf32>
    "tpu.trace_start"() <{level = 10 : i32, message = "bqk,bkd->bqd"}> : () -> ()
    %cst_111 = arith.constant dense<0.000000e+00> : vector<2x8x8xf32>
    %295 = tpu.matmul %294, %281, %cst_111 {dimension_numbers = #tpu.dot_dimension_numbers<[2], [1], [1], [2], [0, 0, 0, 1, 1, 2], [0], [0]>} : vector<2x8x8xf32>, vector<2x8x8xf32>, vector<2x8x8xf32> -> vector<2x8x8xf32>
    "tpu.trace_stop"() : () -> ()
    %296 = vector.extract_strided_slice %244 {offsets = [0, 0, 24], sizes = [2, 8, 8], strides = [1, 1, 1]} : vector<2x8x96xf32> to vector<2x8x8xf32>
    %297 = vector.extract_strided_slice %244 {offsets = [0, 0, 56], sizes = [2, 8, 8], strides = [1, 1, 1]} : vector<2x8x96xf32> to vector<2x8x8xf32>
    %298 = vector.extract_strided_slice %244 {offsets = [0, 0, 88], sizes = [2, 8, 8], strides = [1, 1, 1]} : vector<2x8x96xf32> to vector<2x8x8xf32>
    "tpu.trace_start"() <{level = 10 : i32, message = "bqd,bkd->bqk"}> : () -> ()
    %cst_112 = arith.constant dense<0.000000e+00> : vector<2x8x8xf32>
    %299 = tpu.matmul %296, %297, %cst_112 {dimension_numbers = #tpu.dot_dimension_numbers<[2], [2], [1], [1], [0, 0, 0, 1, 1, 1], [0], [0]>} : vector<2x8x8xf32>, vector<2x8x8xf32>, vector<2x8x8xf32> -> vector<2x8x8xf32>
    "tpu.trace_stop"() : () -> ()
    %300 = vector.broadcast %5 : vector<2x1x8xf32> to vector<2x8x8xf32>
    %301 = arith.addf %299, %300 : vector<2x8x8xf32>
    %cst_113 = arith.constant dense<0xFF800000> : vector<2x8xf32>
    %302 = vector.multi_reduction <maximumf>, %301, %cst_113 [2] : vector<2x8x8xf32> to vector<2x8xf32>
    %303 = vector.shape_cast %302 : vector<2x8xf32> to vector<2x8x1xf32>
    %304 = vector.broadcast %303 : vector<2x8x1xf32> to vector<2x8x8xf32>
    %305 = arith.subf %301, %304 : vector<2x8x8xf32>
    %306 = math.exp %305 : vector<2x8x8xf32>
    %cst_114 = arith.constant dense<0.000000e+00> : vector<2x8xf32>
    %307 = vector.multi_reduction <add>, %306, %cst_114 [2] : vector<2x8x8xf32> to vector<2x8xf32>
    %308 = vector.shape_cast %307 : vector<2x8xf32> to vector<2x8x1xf32>
    %309 = tpu.reciprocal %308 {approx = true} : vector<2x8x1xf32> -> vector<2x8x1xf32>
    %310 = vector.broadcast %309 : vector<2x8x1xf32> to vector<2x8x8xf32>
    %311 = arith.mulf %306, %310 : vector<2x8x8xf32>
    "tpu.trace_start"() <{level = 10 : i32, message = "bqk,bkd->bqd"}> : () -> ()
    %cst_115 = arith.constant dense<0.000000e+00> : vector<2x8x8xf32>
    %312 = tpu.matmul %311, %298, %cst_115 {dimension_numbers = #tpu.dot_dimension_numbers<[2], [1], [1], [2], [0, 0, 0, 1, 1, 2], [0], [0]>} : vector<2x8x8xf32>, vector<2x8x8xf32>, vector<2x8x8xf32> -> vector<2x8x8xf32>
    "tpu.trace_stop"() : () -> ()
    %313 = tpu.concatenate %261, %278, %295, %312 in 2 : vector<2x8x8xf32>, vector<2x8x8xf32>, vector<2x8x8xf32>, vector<2x8x8xf32> -> vector<2x8x32xf32>
    %314 = vector.shape_cast %313 : vector<2x8x32xf32> to vector<16x32xf32>
    %c1_116 = arith.constant 1 : index
    %c0_117 = arith.constant 0 : index
    %c0_118 = arith.constant 0 : index
    %315 = vector.load %arg7[%c1_116, %c0_117, %c0_118] : memref<2x32x32xf32, #tpu.memory_space<vmem>>, vector<1x32x32xf32>
    %316 = vector.shape_cast %315 : vector<1x32x32xf32> to vector<32x32xf32>
    %cst_119 = arith.constant dense<0.000000e+00> : vector<16x32xf32>
    %317 = tpu.matmul %314, %316, %cst_119 {dimension_numbers = #tpu.dot_dimension_numbers<[1], [0], [0], [1], [0, 0, 1, 1], [], []>} : vector<16x32xf32>, vector<32x32xf32>, vector<16x32xf32> -> vector<16x32xf32>
    %318 = arith.addf %213, %317 : vector<16x32xf32>
    %c1_120 = arith.constant 1 : index
    %c0_121 = arith.constant 0 : index
    %c0_122 = arith.constant 0 : index
    %319 = vector.load %arg8[%c1_120, %c0_121, %c0_122] : memref<2x1x32xf32, #tpu.memory_space<vmem>>, vector<1x1x32xf32>
    %320 = vector.shape_cast %319 : vector<1x1x32xf32> to vector<1x32xf32>
    %c1_123 = arith.constant 1 : index
    %c0_124 = arith.constant 0 : index
    %c0_125 = arith.constant 0 : index
    %321 = vector.load %arg9[%c1_123, %c0_124, %c0_125] : memref<2x1x32xf32, #tpu.memory_space<vmem>>, vector<1x1x32xf32>
    %322 = vector.shape_cast %321 : vector<1x1x32xf32> to vector<1x32xf32>
    %cst_126 = arith.constant dense<0.000000e+00> : vector<16xf32>
    %323 = vector.multi_reduction <add>, %318, %cst_126 [1] : vector<16x32xf32> to vector<16xf32>
    %324 = vector.shape_cast %323 : vector<16xf32> to vector<16x1xf32>
    %cst_127 = arith.constant 3.200000e+01 : f32
    %325 = vector.broadcast %cst_127 : f32 to vector<16x1xf32>
    %326 = arith.divf %324, %325 : vector<16x1xf32>
    %327 = vector.broadcast %326 : vector<16x1xf32> to vector<16x32xf32>
    %328 = arith.subf %318, %327 : vector<16x32xf32>
    %329 = arith.mulf %328, %328 : vector<16x32xf32>
    %cst_128 = arith.constant dense<0.000000e+00> : vector<16xf32>
    %330 = vector.multi_reduction <add>, %329, %cst_128 [1] : vector<16x32xf32> to vector<16xf32>
    %331 = vector.shape_cast %330 : vector<16xf32> to vector<16x1xf32>
    %cst_129 = arith.constant 0.0322580636 : f32
    %332 = vector.broadcast %cst_129 : f32 to vector<16x1xf32>
    %333 = arith.mulf %331, %332 : vector<16x1xf32>
    %334 = math.sqrt %333 : vector<16x1xf32>
    %cst_130 = arith.constant 9.99999997E-7 : f32
    %335 = vector.broadcast %cst_130 : f32 to vector<16x1xf32>
    %336 = arith.addf %334, %335 : vector<16x1xf32>
    %337 = tpu.reciprocal %336 {approx = true} : vector<16x1xf32> -> vector<16x1xf32>
    %338 = vector.broadcast %326 : vector<16x1xf32> to vector<16x32xf32>
    %339 = arith.subf %318, %338 : vector<16x32xf32>
    %340 = vector.broadcast %320 : vector<1x32xf32> to vector<16x32xf32>
    %341 = arith.mulf %340, %339 : vector<16x32xf32>
    %342 = vector.broadcast %337 : vector<16x1xf32> to vector<16x32xf32>
    %343 = arith.mulf %341, %342 : vector<16x32xf32>
    %344 = vector.broadcast %322 : vector<1x32xf32> to vector<16x32xf32>
    %345 = arith.addf %343, %344 : vector<16x32xf32>
    %c1_131 = arith.constant 1 : index
    %c0_132 = arith.constant 0 : index
    %c0_133 = arith.constant 0 : index
    %346 = vector.load %arg10[%c1_131, %c0_132, %c0_133] : memref<2x96x64xf32, #tpu.memory_space<vmem>>, vector<1x96x64xf32>
    %347 = vector.shape_cast %346 : vector<1x96x64xf32> to vector<96x64xf32>
    %c1_134 = arith.constant 1 : index
    %c0_135 = arith.constant 0 : index
    %c0_136 = arith.constant 0 : index
    %348 = vector.load %arg11[%c1_134, %c0_135, %c0_136] : memref<2x1x64xf32, #tpu.memory_space<vmem>>, vector<1x1x64xf32>
    %349 = vector.shape_cast %348 : vector<1x1x64xf32> to vector<1x64xf32>
    %c1_i32_137 = arith.constant 1 : i32
    %350 = tpu.dynamic_rotate %345 by %c1_i32_137 dim 0 : vector<16x32xf32>, i32 -> vector<16x32xf32>
    %cst_138 = arith.constant 0.000000e+00 : f32
    %351 = vector.shape_cast %24 : vector<16x1xi1> to vector<16x1xi1>
    %352 = vector.broadcast %351 : vector<16x1xi1> to vector<16x32xi1>
    %353 = vector.broadcast %cst_138 : f32 to vector<16x32xf32>
    %354 = arith.select %352, %350, %353 : vector<16x32xi1>, vector<16x32xf32>
    %c15_i32_139 = arith.constant 15 : i32
    %355 = tpu.dynamic_rotate %345 by %c15_i32_139 dim 0 : vector<16x32xf32>, i32 -> vector<16x32xf32>
    %cst_140 = arith.constant 0.000000e+00 : f32
    %356 = vector.shape_cast %42 : vector<16x1xi1> to vector<16x1xi1>
    %357 = vector.broadcast %356 : vector<16x1xi1> to vector<16x32xi1>
    %358 = vector.broadcast %cst_140 : f32 to vector<16x32xf32>
    %359 = arith.select %357, %355, %358 : vector<16x32xi1>, vector<16x32xf32>
    %360 = tpu.concatenate %354, %345, %359 in 1 : vector<16x32xf32>, vector<16x32xf32>, vector<16x32xf32> -> vector<16x96xf32>
    %cst_141 = arith.constant dense<0.000000e+00> : vector<16x64xf32>
    %361 = tpu.matmul %360, %347, %cst_141 {dimension_numbers = #tpu.dot_dimension_numbers<[1], [0], [0], [1], [0, 0, 1, 1], [], []>} : vector<16x96xf32>, vector<96x64xf32>, vector<16x64xf32> -> vector<16x64xf32>
    %362 = vector.broadcast %349 : vector<1x64xf32> to vector<16x64xf32>
    %363 = arith.addf %361, %362 : vector<16x64xf32>
    %cst_142 = arith.constant 0.000000e+00 : f32
    %364 = vector.broadcast %cst_142 : f32 to vector<16x64xf32>
    %365 = arith.maximumf %363, %364 : vector<16x64xf32>
    %c1_143 = arith.constant 1 : index
    %c0_144 = arith.constant 0 : index
    %c0_145 = arith.constant 0 : index
    %366 = vector.load %arg12[%c1_143, %c0_144, %c0_145] : memref<2x192x32xf32, #tpu.memory_space<vmem>>, vector<1x192x32xf32>
    %367 = vector.shape_cast %366 : vector<1x192x32xf32> to vector<192x32xf32>
    %c1_146 = arith.constant 1 : index
    %c0_147 = arith.constant 0 : index
    %c0_148 = arith.constant 0 : index
    %368 = vector.load %arg13[%c1_146, %c0_147, %c0_148] : memref<2x1x32xf32, #tpu.memory_space<vmem>>, vector<1x1x32xf32>
    %369 = vector.shape_cast %368 : vector<1x1x32xf32> to vector<1x32xf32>
    %c1_i32_149 = arith.constant 1 : i32
    %370 = tpu.dynamic_rotate %365 by %c1_i32_149 dim 0 : vector<16x64xf32>, i32 -> vector<16x64xf32>
    %cst_150 = arith.constant 0.000000e+00 : f32
    %371 = vector.shape_cast %24 : vector<16x1xi1> to vector<16x1xi1>
    %372 = vector.broadcast %371 : vector<16x1xi1> to vector<16x64xi1>
    %373 = vector.broadcast %cst_150 : f32 to vector<16x64xf32>
    %374 = arith.select %372, %370, %373 : vector<16x64xi1>, vector<16x64xf32>
    %c15_i32_151 = arith.constant 15 : i32
    %375 = tpu.dynamic_rotate %365 by %c15_i32_151 dim 0 : vector<16x64xf32>, i32 -> vector<16x64xf32>
    %cst_152 = arith.constant 0.000000e+00 : f32
    %376 = vector.shape_cast %42 : vector<16x1xi1> to vector<16x1xi1>
    %377 = vector.broadcast %376 : vector<16x1xi1> to vector<16x64xi1>
    %378 = vector.broadcast %cst_152 : f32 to vector<16x64xf32>
    %379 = arith.select %377, %375, %378 : vector<16x64xi1>, vector<16x64xf32>
    %380 = tpu.concatenate %374, %365, %379 in 1 : vector<16x64xf32>, vector<16x64xf32>, vector<16x64xf32> -> vector<16x192xf32>
    %cst_153 = arith.constant dense<0.000000e+00> : vector<16x32xf32>
    %381 = tpu.matmul %380, %367, %cst_153 {dimension_numbers = #tpu.dot_dimension_numbers<[1], [0], [0], [1], [0, 0, 1, 1], [], []>} : vector<16x192xf32>, vector<192x32xf32>, vector<16x32xf32> -> vector<16x32xf32>
    %382 = vector.broadcast %369 : vector<1x32xf32> to vector<16x32xf32>
    %383 = arith.addf %381, %382 : vector<16x32xf32>
    %384 = arith.addf %318, %383 : vector<16x32xf32>
    %c0_154 = arith.constant 0 : index
    %c0_155 = arith.constant 0 : index
    %385 = vector.load %arg14[%c0_154, %c0_155] : memref<1x32xf32, #tpu.memory_space<vmem>>, vector<1x32xf32>
    %c0_156 = arith.constant 0 : index
    %c0_157 = arith.constant 0 : index
    %386 = vector.load %arg15[%c0_156, %c0_157] : memref<1x32xf32, #tpu.memory_space<vmem>>, vector<1x32xf32>
    %cst_158 = arith.constant dense<0.000000e+00> : vector<16xf32>
    %387 = vector.multi_reduction <add>, %384, %cst_158 [1] : vector<16x32xf32> to vector<16xf32>
    %388 = vector.shape_cast %387 : vector<16xf32> to vector<16x1xf32>
    %cst_159 = arith.constant 3.200000e+01 : f32
    %389 = vector.broadcast %cst_159 : f32 to vector<16x1xf32>
    %390 = arith.divf %388, %389 : vector<16x1xf32>
    %391 = vector.broadcast %390 : vector<16x1xf32> to vector<16x32xf32>
    %392 = arith.subf %384, %391 : vector<16x32xf32>
    %393 = arith.mulf %392, %392 : vector<16x32xf32>
    %cst_160 = arith.constant dense<0.000000e+00> : vector<16xf32>
    %394 = vector.multi_reduction <add>, %393, %cst_160 [1] : vector<16x32xf32> to vector<16xf32>
    %395 = vector.shape_cast %394 : vector<16xf32> to vector<16x1xf32>
    %cst_161 = arith.constant 0.0322580636 : f32
    %396 = vector.broadcast %cst_161 : f32 to vector<16x1xf32>
    %397 = arith.mulf %395, %396 : vector<16x1xf32>
    %398 = math.sqrt %397 : vector<16x1xf32>
    %cst_162 = arith.constant 9.99999997E-7 : f32
    %399 = vector.broadcast %cst_162 : f32 to vector<16x1xf32>
    %400 = arith.addf %398, %399 : vector<16x1xf32>
    %401 = tpu.reciprocal %400 {approx = true} : vector<16x1xf32> -> vector<16x1xf32>
    %402 = vector.broadcast %390 : vector<16x1xf32> to vector<16x32xf32>
    %403 = arith.subf %384, %402 : vector<16x32xf32>
    %404 = vector.broadcast %385 : vector<1x32xf32> to vector<16x32xf32>
    %405 = arith.mulf %404, %403 : vector<16x32xf32>
    %406 = vector.broadcast %401 : vector<16x1xf32> to vector<16x32xf32>
    %407 = arith.mulf %405, %406 : vector<16x32xf32>
    %408 = vector.broadcast %386 : vector<1x32xf32> to vector<16x32xf32>
    %409 = arith.addf %407, %408 : vector<16x32xf32>
    %c0_163 = arith.constant 0 : index
    %c0_164 = arith.constant 0 : index
    %410 = vector.load %arg16[%c0_163, %c0_164] : memref<16x32xf32, #tpu.memory_space<vmem>>, vector<16x32xf32>
    tpu.vector_store %arg16[%c0_163, %c0_164], %409 {strides = array<i32>} : memref<16x32xf32, #tpu.memory_space<vmem>>, vector<16x32xf32>,
    return
  }
}

</mosaic_0001>

<bundles_post_ra>
// kernel: tpu_custom_call.1
= control target key start
LH: loop header
LB: loop body
LE: loop exit
PB: predicated region body
PF: predicated region fallthrough
CT: control target
= control target key end

     0   :  { %s3285_s0 = inlined_call_operand.vmem [shape: f32[16,32], index: 0, kind: input, shape index: {}]   ;;  %s3286_s1 = inlined_call_operand.vmem [shape: f32[2,1,8], index: 1, kind: input, shape index: {}]   ;;  %s3287_s2 = inlined_call_operand.vmem [shape: f32[32,32], index: 2, kind: input, shape index: {}]   ;;  %s3288_s3 = inlined_call_operand.vmem [shape: f32[16,32], index: 3, kind: input, shape index: {}]   ;;  %s3289_s4 = inlined_call_operand.vmem [shape: f32[2,1,32], index: 4, kind: input, shape index: {}]   ;;  %s3290_s5 = inlined_call_operand.vmem [shape: f32[2,1,32], index: 5, kind: input, shape index: {}]   ;;  %s3291_s6 = inlined_call_operand.vmem [shape: f32[2,32,96], index: 6, kind: input, shape index: {}]   ;;  %s3292_s7 = inlined_call_operand.vmem [shape: f32[2,32,32], index: 7, kind: input, shape index: {}]   ;;  %s3293_s8 = inlined_call_operand.vmem [shape: f32[2,1,32], index: 8, kind: input, shape index: {}]   ;;  %s3294_s9 = inlined_call_operand.vmem [shape: f32[2,1,32], index: 9, kind: input, shape index: {}]   ;;  %s3295_s10 = inlined_call_operand.vmem [shape: f32[2,96,64], index: 10, kind: input, shape index: {}]   ;;  %s3296_s11 = inlined_call_operand.vmem [shape: f32[2,1,64], index: 11, kind: input, shape index: {}]   ;;  %s3297_s12 = inlined_call_operand.vmem [shape: f32[2,192,32], index: 12, kind: input, shape index: {}]   ;;  %s3298_s13 = inlined_call_operand.vmem [shape: f32[2,1,32], index: 13, kind: input, shape index: {}]   ;;  %s3299_s14 = inlined_call_operand.vmem [shape: f32[1,32], index: 14, kind: input, shape index: {}]   ;;  %s3300_s15 = inlined_call_operand.vmem [shape: f32[1,32], index: 15, kind: input, shape index: {}]   ;;  %s3301_s16 = inlined_call_operand.hbm [shape: f32[16,32], index: 16, kind: output, shape index: {}]  }
   0x1   :  { %3317 = sst [smem:[#allocation5_spill]] %s3285_s0 }
   0x2   :  { %v59_v0 = vld [vmem:[%s3287_s2 + $0x18] sm:$0xff]  ;;  %v58_v1 = vld [vmem:[%s3287_s2 + $0x10] sm:$0xff]  ;;  %v57_v2 = vld [vmem:[%s3287_s2 + $0x8] sm:$0xff]  ;;  %vm62_vm0 = vcmask 261120   ;;  %s3318_s0 = sld [smem:[#allocation5_spill]] }
   0x3   :  { %81 = vmatpush.msra.mxu2 %v59_v0  ;;  %v56_v3 = vld [vmem:[%s3287_s2] sm:$0xff] }
   0x5   :  { %82 = vmatpush.msra.mxu2 %v58_v1 }
   0x7   :  { %83 = vmatpush.msra.mxu2 %v57_v2 }
   0x8   :  { %v54_v4 = vld [vmem:[%s3318_s0] sm:$0xff] }
   0x9   :  { %84 = vmatpush.msra.mxu2 %v56_v3 }
   0xa   :  { %21 = vsyncpa [#allocation3], 0  ;;  %2091 = vmatmul.msk.f32.vlgmr.msra.gmra.mxu2 %vm62_vm0, %v54_v4  ;;  %v55_v5 = vld [vmem:[%s3318_s0 + $0x8] sm:$0xff]  ;;  %v60_v6 = vld [vmem:[%s3288_s3] sm:$0xff]  ;;  %v2395_v14 = vmov 32.0   ;;  %s2396_s18 = smov 96  }
   0xb   :  { %v61_v10 = vld [vmem:[%s3288_s3 + $0x8] sm:$0xff]  ;;  %2261 = vrcp.f32 %v2395_v14  ;;  %v197_v31 = vld [vmem:[%s3291_s6 + $0x18] sm:$0xff]  ;;  %v196_v32 = vld [vmem:[%s3291_s6 + $0x10] sm:$0xff]  ;;  %s2397_s19 = smov 88   ;;  %s2398_s20 = smov 64   ;;  %vm236_vm6 = vcmask 64512  }
   0xc   :  { %216 = vmatpush.msra.mxu1 %v197_v31  ;;  %v195_v33 = vld [vmem:[%s3291_s6 + $0x8] sm:$0xff]  ;;  %v194_v34 = vld [vmem:[%s3291_s6] sm:$0xff]  ;;  %s2399_s2 = smov 112   ;;  %s2400_s21 = smov 120   ;;  %vm778_vm7 = vcmask 130048   ;;  %vm781_vm8 = vcmask 195584  }
   0xd   :  { %v2245_v56 = vld [vmem:[%s3289_s4] ss:$0 sm:$0xff]  ;;  %s3315_s3 = smov 72   ;;  %s2402_s22 = smov 80  }
   0xe   :  { %217 = vmatpush.msra.mxu1 %v196_v32  ;;  %v2246_v61 = vld [vmem:[%s3290_s5] ss:$0 sm:$0xff]  ;;  %s2403_s23 = smov 104   ;;  %s3308_s28 = smov 56  }
   0xf   :  { %s3307_s29 = smov 48   ;;  %s3303_s30 = smov 40  }
  0x10   :  { %218 = vmatpush.msra.mxu1 %v195_v33  ;;  %s3305_s0 = smov 8   ;;  %s3309_s17 = smov 16  }
  0x11   :  { %v2262_v15 = vpop.eup %2261  ;;  %s3311_s24 = smov 24   ;;  %s3332_s26 = smov 16  }
  0x12   :  { %2092 = vmatmul.msk.f32.gmra.mxu2 %vm62_vm0, %v55_v5  ;;  %v134_v16 = vmul.f32 32.0, %v2262_v15  ;;  %vm138_vm1 = vweird.f32 %v2262_v15  ;;  %219 = vmatpush.msra.mxu1 %v194_v34 }
  0x14   :  { %v135_v17 = vsub.f32 1.0, %v134_v16 }
  0x16   :  { %v136_v18 = vmul.f32 %v2262_v15, %v135_v17  ;;  %v2600_v17 = vld [vmem:[%s3286_s1 + $0x1] ss:$0 sm:$0xff] }
  0x18   :  { %v137_v19 = vadd.f32 %v2262_v15, %v136_v18 }
  0x1a   :  { %v2532_v20 = vsel %vm138_vm1, %v2262_v15, %v137_v19 }
  0x8d   :  { %v86_v7 = vpop.f32.mrf.mxu2 }
  0x8e   :  { %v2521_v8 = vadd.f32 %v86_v7, %v60_v6 }
  0x90   :  { %v127_v9 = vsel %vm62_vm0, %v2521_v8, 0.0 }
  0x91   :  { %128 = vadd.xlane.f32.xlu0 %v127_v9 }
  0x95   :  { %v89_v11 = vpop.f32.mrf.mxu2 }
  0x96   :  { %v2528_v12 = vadd.f32 %v89_v11, %v61_v10 }
  0x98   :  { %v130_v13 = vsel %vm62_vm0, %v2528_v12, 0.0 }
  0x99   :  { %131 = vadd.xlane.f32.xlu0 %v130_v13 }
 0x104   :  { %v129_v21 = vpop.xlane.xlu0 %128 }
 0x105   :  { %v140_v22 = vmul.f32 %v2532_v20, %v129_v21 }
 0x107   :  { %v142_v23 = vsub.f32 %v2521_v8, %v140_v22 }
 0x109   :  { %v144_v24 = vmul.f32 %v142_v23, %v142_v23  ;;  %v185_v60 = vmul.f32 %v2245_v56, %v142_v23 }
 0x10b   :  { %v146_v25 = vsel %vm62_vm0, %v144_v24, 0.0  ;;  %v2248_v24 = vld [vmem:[%s3286_s1] ss:$0 sm:$0xff] }
 0x10c   :  { %147 = vadd.xlane.f32.xlu1 %v146_v25  ;;  %v132_v26 = vpop.xlane.xlu0 %131 }
 0x10d   :  { %v141_v27 = vmul.f32 %v2532_v20, %v132_v26 }
 0x10f   :  { %v143_v28 = vsub.f32 %v2528_v12, %v141_v27 }
 0x111   :  { %v145_v29 = vmul.f32 %v143_v28, %v143_v28  ;;  %v186_v3 = vmul.f32 %v2245_v56, %v143_v28 }
 0x113   :  { %v149_v30 = vsel %vm62_vm0, %v145_v29, 0.0 }
 0x114   :  { %150 = vadd.xlane.f32.xlu1 %v149_v30 }
 0x17f   :  { %v148_v35 = vpop.xlane.xlu1 %147 }
 0x180   :  { %v152_v36 = vmul.f32 0.032258064, %v148_v35 }
 0x182   :  { %2263 = vrsqrt.f32 %v152_v36  ;;  %vm161_vm2 = vcmp.eq.f32.partialorder %v152_v36, inf  ;;  %v164_v49 = vand.u32 2147483648, %v152_v36  ;;  %vm163_vm3 = vcmp.eq.f32.partialorder %v152_v36, 0.0 }
 0x187   :  { %v151_v37 = vpop.xlane.xlu1 %150 }
 0x188   :  { %v2264_v38 = vpop.eup %2263  ;;  %v153_v39 = vmul.f32 0.032258064, %v151_v37 }
 0x189   :  { %v155_v40 = vmul.f32 %v2264_v38, %v152_v36 }
 0x18a   :  { %2265 = vrsqrt.f32 %v153_v39  ;;  %vm173_vm4 = vcmp.eq.f32.partialorder %v153_v39, inf  ;;  %v176_v58 = vand.u32 2147483648, %v153_v39  ;;  %vm175_vm5 = vcmp.eq.f32.partialorder %v153_v39, 0.0 }
 0x18b   :  { %v156_v41 = vmul.f32 %v2264_v38, %v155_v40 }
 0x18d   :  { %v157_v42 = vmul.f32 0.5, %v156_v41 }
 0x18f   :  { %v158_v43 = vsub.f32 1.5, %v157_v42 }
 0x190   :  { %v2266_v44 = vpop.eup %2265 }
 0x191   :  { %v167_v45 = vmul.f32 %v2266_v44, %v153_v39  ;;  %v159_v46 = vmul.f32 %v2264_v38, %v158_v43 }
 0x193   :  { %v160_v47 = vmul.f32 %v159_v46, %v152_v36  ;;  %v168_v48 = vmul.f32 %v2266_v44, %v167_v45 }
 0x195   :  { %v162_v50 = vsel %vm161_vm2, %v152_v36, %v160_v47  ;;  %v169_v51 = vmul.f32 0.5, %v168_v48 }
 0x196   :  { %v165_v52 = vsel %vm163_vm3, %v164_v49, %v162_v50  ;;  %vm934_vm3 = vcmask 523264  }
 0x197   :  { %v178_v53 = vadd.f32 1e-06, %v165_v52  ;;  %v170_v54 = vsub.f32 1.5, %v169_v51 }
 0x199   :  { %2267 = vrcp.f32 %v178_v53  ;;  %v171_v55 = vmul.f32 %v2266_v44, %v170_v54 }
 0x19b   :  { %v172_v57 = vmul.f32 %v171_v55, %v153_v39 }
 0x19d   :  { %v174_v59 = vsel %vm173_vm4, %v153_v39, %v172_v57  ;;  %vm940_vm4 = vcmask 785408  }
 0x19e   :  { %v177_v62 = vsel %vm175_vm5, %v176_v58, %v174_v59 }
 0x19f   :  { %v2268_v63 = vpop.eup %2267  ;;  %v179_v0 = vadd.f32 1e-06, %v177_v62 }
 0x1a0   :  { %v187_v1 = vmul.f32 %v2268_v63, %v185_v60 }
 0x1a1   :  { %2269 = vrcp.f32 %v179_v0 }
 0x1a2   :  { %v192_v2 = vadd.f32 %v2246_v61, %v187_v1 }
 0x1a4   :  { %2093 = vmatmul.msk.f32.vlgmr.msra.gmra.mxu1 %vm62_vm0, %v192_v2 }
 0x1a7   :  { %v2270_v4 = vpop.eup %2269 }
 0x1a8   :  { %v188_v5 = vmul.f32 %v2270_v4, %v186_v3 }
 0x1aa   :  { %v193_v6 = vadd.f32 %v2246_v61, %v188_v5 }
 0x1ac   :  { %2094 = vmatmul.msk.f32.gmra.mxu1 %vm62_vm0, %v193_v6 }
 0x221   :  { %v2560_v7 = vpop.f32.mrf.mxu1 }
 0x222   :  { %234 = vrot.lane.b32.xlu0 %v2560_v7, %s2396_s18  ;;  %364 = vrot.lane.b32.xlu1 %v2560_v7, %s2397_s19 }
 0x229   :  { %v2566_v9 = vpop.f32.mrf.mxu1 }
 0x22a   :  { %392 = vrot.lane.b32.xlu1 %v2566_v9, %s2397_s19  ;;  %336 = vrot.lane.b32.xlu0 %v2566_v9, %s2398_s20 }
 0x22b   :  { %262 = vrot.lane.b32.xlu2 %v2566_v9, %s2396_s18 }
 0x232   :  { %492 = vrot.lane.b32.xlu1 %v2560_v7, %s2399_s2  ;;  %362 = vrot.lane.b32.xlu0 %v2560_v7, %s2400_s21 }
 0x23a   :  { %624 = vrot.lane.b32.xlu1 %v2560_v7, %s3315_s3  ;;  %390 = vrot.lane.b32.xlu0 %v2566_v9, %s2400_s21 }
 0x242   :  { %522 = vrot.lane.b32.xlu0 %v2566_v9, %s2402_s22 }
 0x24a   :  { %520 = vrot.lane.b32.xlu0 %v2566_v9, %s2399_s2 }
 0x252   :  { %650 = vrot.lane.b32.xlu0 %v2566_v9, %s2403_s23 }
 0x285   :  { %v263_v10 = vpop.permute.xlu2 %262 }
 0x286   :  { %2097 = vmatpush.xpose.msk.msra.mxu3 %vm236_vm6, %v263_v10 }
 0x289   :  { %2098 = vmatmul.msk.f32.vlgmr.msra.gmra.mxu3 %vm236_vm6, %v2566_v9 }
 0x294   :  { %v365_v11 = vpop.permute.xlu1 %364  ;;  %v235_v13 = vpop.permute.xlu0 %234 }
 0x295   :  { %2095 = vmatpush.xpose.msk.msrb.mxu2 %vm236_vm6, %v235_v13 }
 0x298   :  { %2096 = vmatmul.msk.f32.vlgmr.msrb.gmra.mxu2 %vm236_vm6, %v2560_v7 }
 0x299   :  { %2101 = vmatpush.xpose.msk.msra.mxu2 %vm236_vm6, %v365_v11 }
 0x29c   :  { %v393_v14 = vpop.permute.xlu1 %392  ;;  %v337_v15 = vpop.permute.xlu0 %336 }
 0x29d   :  { %357 = vmatpush.msrb.mxu3 %v337_v15 }
 0x29f   :  { %2103 = vmatpush.xpose.msk.msra.mxu3 %vm236_vm6, %v393_v14 }
 0x2a4   :  { %v363_v16 = vpop.permute.xlu0 %362  ;;  %v493_v27 = vpop.permute.xlu1 %492 }
 0x2a5   :  { %2102 = vmatmul.msk.f32.vlgmr.msra.gmra.mxu2 %vm236_vm6, %v363_v16 }
 0x2ac   :  { %v625_v32 = vpop.permute.xlu1 %624  ;;  %v391_v37 = vpop.permute.xlu0 %390 }
 0x2b4   :  { %v523_v41 = vpop.permute.xlu0 %522 }
 0x2bc   :  { %v521_v46 = vpop.permute.xlu0 %520 }
 0x2c4   :  { %v651_v48 = vpop.permute.xlu0 %650 }
 0x30c   :  { %v285_v18 = vpop.f32.mrf.mxu3 }
 0x30d   :  { %v286_v19 = vadd.f32 %v2600_v17, %v285_v18  ;;  %v2225_v18 = vpack.i.bf16 %v2566_v9, %v2560_v7 }
 0x30f   :  { %v291_v21 = vsel %vm236_vm6, %v286_v19, -inf }
 0x310   :  { %292 = vmax.xlane.f32.xlu2 %v291_v21 }
 0x31b   :  { %v258_v22 = vpop.f32.mrf.mxu2 }
 0x31c   :  { %v259_v35 = vadd.f32 %v2248_v24, %v258_v22 }
 0x31e   :  { %v288_v36 = vsel %vm236_vm6, %v259_v35, -inf }
 0x328   :  { %494 = vrot.lane.b32.xlu2 %v2560_v7, %s2402_s22  ;;  %v387_v23 = vpop.f32.mrf.mxu2 }
 0x329   :  { %v388_v25 = vadd.f32 %v2248_v24, %v387_v23 }
 0x32b   :  { %v418_v26 = vsel %vm236_vm6, %v388_v25, -inf }
 0x330   :  { %652 = vrot.lane.b32.xlu2 %v2566_v9, %s3315_s3 }
 0x359   :  { %419 = vmax.xlane.f32.xlu2 %v418_v26 }
 0x383   :  { %v293_v28 = vpop.xlane.xlu2 %292 }
 0x384   :  { %v295_v29 = vsub.f32 %v286_v19, %v293_v28 }
 0x386   :  { %v298_v30 = vmul.f32 1.442695, %v295_v29 }
 0x388   :  { %2271 = vpow2.f32 %v298_v30 }
 0x38b   :  { %v495_v31 = vpop.permute.xlu2 %494 }
 0x38c   :  { %2107 = vmatpush.xpose.msk.msrb.mxu2 %vm236_vm6, %v495_v31 }
 0x38e   :  { %v2272_v33 = vpop.eup %2271 }
 0x38f   :  { %2108 = vmatmul.msk.f32.vlgmr.msrb.gmra.mxu2 %vm236_vm6, %v493_v27  ;;  %v303_v34 = vsel %vm236_vm6, %v2272_v33, 0.0 }
 0x390   :  { %2113 = vmatpush.xpose.msk.msra.mxu2 %vm236_vm6, %v625_v32  ;;  %304 = vadd.xlane.f32.xlu1 %v303_v34 }
 0x393   :  { %v653_v44 = vpop.permute.xlu2 %652 }
 0x3a9   :  { %622 = vrot.lane.b32.xlu1 %v2560_v7, %s2403_s23 }
 0x3cc   :  { %v420_v55 = vpop.xlane.xlu2 %419 }
 0x3cd   :  { %v424_v58 = vsub.f32 %v388_v25, %v420_v55 }
 0x3cf   :  { %v426_v60 = vmul.f32 1.442695, %v424_v58 }
 0x3d3   :  { %289 = vmax.xlane.f32.xlu1 %v288_v36 }
 0x403   :  { %v305_v38 = vpop.xlane.xlu1 %304 }
 0x404   :  { %2273 = vrcp.f32 %v305_v38 }
 0x40a   :  { %v2274_v39 = vpop.eup %2273 }
 0x40b   :  { %v309_v40 = vmul.f32 %v2274_v39, %v2272_v33 }
 0x40d   :  { %2100 = vmatmul.msk.f32.vlgmr.msrb.gmra.mxu3 %vm236_vm6, %v309_v40 }
 0x40e   :  { %2109 = vmatpush.xpose.msk.msrb.mxu3 %vm236_vm6, %v523_v41 }
 0x412   :  { %v517_v42 = vpop.f32.mrf.mxu2 }
 0x413   :  { %v518_v43 = vadd.f32 %v2248_v24, %v517_v42 }
 0x415   :  { %2104 = vmatmul.msk.f32.vlgmr.msra.gmra.mxu3 %vm236_vm6, %v391_v37  ;;  %v548_v45 = vsel %vm236_vm6, %v518_v43, -inf }
 0x416   :  { %2115 = vmatpush.xpose.msk.msra.mxu3 %vm236_vm6, %v653_v44  ;;  %549 = vmax.xlane.f32.xlu2 %v548_v45 }
 0x41b   :  { %v623_v47 = vpop.permute.xlu1 %622 }
 0x41c   :  { %2114 = vmatmul.msk.f32.vlgmr.msra.gmra.mxu2 %vm236_vm6, %v623_v47 }
 0x41d   :  { %2110 = vmatmul.msk.f32.vlgmr.msrb.gmra.mxu3 %vm236_vm6, %v521_v46 }
 0x425   :  { %2116 = vmatmul.msk.f32.vlgmr.msra.gmra.mxu3 %vm236_vm6, %v651_v48 }
 0x446   :  { %v290_v49 = vpop.xlane.xlu1 %289 }
 0x447   :  { %v294_v50 = vsub.f32 %v259_v35, %v290_v49 }
 0x449   :  { %v296_v51 = vmul.f32 1.442695, %v294_v50 }
 0x44b   :  { %2275 = vpow2.f32 %v296_v51 }
 0x44c   :  { %2277 = vpow2.f32 %v426_v60 }
 0x451   :  { %v2627_v52 = vpop.eup %2275 }
 0x452   :  { %v300_v53 = vsel %vm236_vm6, %v2627_v52, 0.0  ;;  %v2638_v6 = vpop.eup %2277 }
 0x453   :  { %301 = vadd.xlane.f32.xlu1 %v300_v53  ;;  %v430_v13 = vsel %vm236_vm6, %v2638_v6, 0.0 }
 0x489   :  { %v550_v61 = vpop.xlane.xlu2 %549 }
 0x48a   :  { %v554_v2 = vsub.f32 %v518_v43, %v550_v61 }
 0x48c   :  { %v556_v5 = vmul.f32 1.442695, %v554_v2 }
 0x48e   :  { %2279 = vpow2.f32 %v556_v5 }
 0x490   :  { %v2631_v54 = vpop.f32.mrf.mxu3 }
 0x494   :  { %v2644_v15 = vpop.eup %2279 }
 0x495   :  { %v560_v16 = vsel %vm236_vm6, %v2644_v15, 0.0 }
 0x498   :  { %v415_v56 = vpop.f32.mrf.mxu3 }
 0x499   :  { %v416_v57 = vadd.f32 %v2600_v17, %v415_v56 }
 0x49b   :  { %v421_v59 = vsel %vm236_vm6, %v416_v57, -inf }
 0x49c   :  { %422 = vmax.xlane.f32.xlu0 %v421_v59 }
 0x49f   :  { %v647_v62 = vpop.f32.mrf.mxu2 }
 0x4a0   :  { %v648_v63 = vadd.f32 %v2248_v24, %v647_v62  ;;  %v545_v0 = vpop.f32.mrf.mxu3 }
 0x4a1   :  { %v546_v1 = vadd.f32 %v2600_v17, %v545_v0 }
 0x4a2   :  { %v678_v3 = vsel %vm236_vm6, %v648_v63, -inf }
 0x4a3   :  { %v551_v4 = vsel %vm236_vm6, %v546_v1, -inf }
 0x4a4   :  { %679 = vmax.xlane.f32.xlu0 %v678_v3  ;;  %552 = vmax.xlane.f32.xlu1 %v551_v4 }
 0x4a8   :  { %v675_v10 = vpop.f32.mrf.mxu3 }
 0x4a9   :  { %v676_v11 = vadd.f32 %v2600_v17, %v675_v10 }
 0x4ab   :  { %v681_v14 = vsel %vm236_vm6, %v676_v11, -inf }
 0x4ac   :  { %431 = vadd.xlane.f32.xlu0 %v430_v13  ;;  %682 = vmax.xlane.f32.xlu2 %v681_v14 }
 0x4b4   :  { %561 = vadd.xlane.f32.xlu0 %v560_v16  ;;  %v786_v16 = vld [vmem:[%s3292_s7 + $0x10] sm:$0xff] }
 0x4bd   :  { %2226 = vrot.lane.b32.xlu1 %v2225_v18, %s3308_s28  ;;  %s3313_s28 = smov 32  }
 0x4c4   :  { %310 = vrot.lane.b32.xlu2 %v2560_v7, %s2398_s20 }
 0x4c6   :  { %v302_v19 = vpop.xlane.xlu1 %301 }
 0x4cc   :  { %2231 = vrot.lane.b32.xlu2 %v2225_v18, %s3307_s29  ;;  %v785_v18 = vld [vmem:[%s3292_s7 + $0x8] sm:$0xff] }
 0x4d4   :  { %700 = vrot.lane.b32.xlu2 %v2560_v7, %s3303_s30 }
 0x50f   :  { %v423_v17 = vpop.xlane.xlu0 %422 }
 0x510   :  { %v425_v21 = vsub.f32 %v416_v57, %v423_v17  ;;  %v784_v17 = vld [vmem:[%s3292_s7] sm:$0xff] }
 0x512   :  { %v428_v22 = vmul.f32 1.442695, %v425_v21 }
 0x514   :  { %2281 = vpow2.f32 %v428_v22 }
 0x517   :  { %v680_v23 = vpop.xlane.xlu0 %679  ;;  %v553_v24 = vpop.xlane.xlu1 %552 }
 0x518   :  { %v684_v25 = vsub.f32 %v648_v63, %v680_v23  ;;  %v555_v28 = vsub.f32 %v546_v1, %v553_v24 }
 0x51a   :  { %v2282_v26 = vpop.eup %2281  ;;  %v686_v27 = vmul.f32 1.442695, %v684_v25  ;;  %v558_v30 = vmul.f32 1.442695, %v555_v28 }
 0x51b   :  { %v433_v29 = vsel %vm236_vm6, %v2282_v26, 0.0 }
 0x51c   :  { %434 = vadd.xlane.f32.xlu1 %v433_v29  ;;  %2283 = vpow2.f32 %v686_v27 }
 0x51d   :  { %2285 = vrcp.f32 %v302_v19 }
 0x51e   :  { %2287 = vpow2.f32 %v558_v30 }
 0x51f   :  { %v683_v31 = vpop.xlane.xlu2 %682  ;;  %v432_v32 = vpop.xlane.xlu0 %431 }
 0x520   :  { %v685_v33 = vsub.f32 %v676_v11, %v683_v31  ;;  %2289 = vrcp.f32 %v432_v32 }
 0x522   :  { %v2284_v7 = vpop.eup %2283  ;;  %v688_v36 = vmul.f32 1.442695, %v685_v33 }
 0x523   :  { %v2286_v34 = vpop.eup %2285  ;;  %v690_v35 = vsel %vm236_vm6, %v2284_v7, 0.0 }
 0x524   :  { %691 = vadd.xlane.f32.xlu0 %v690_v35  ;;  %v308_v38 = vmul.f32 %v2286_v34, %v2627_v52  ;;  %v2288_v39 = vpop.eup %2287  ;;  %2291 = vpow2.f32 %v688_v36 }
 0x525   :  { %v563_v41 = vsel %vm236_vm6, %v2288_v39, 0.0 }
 0x526   :  { %v2290_v42 = vpop.eup %2289 }
 0x527   :  { %v311_v37 = vpop.permute.xlu2 %310  ;;  %v562_v40 = vpop.xlane.xlu0 %561  ;;  %v438_v50 = vmul.f32 %v2290_v42, %v2638_v6 }
 0x528   :  { %331 = vmatpush.msra.mxu0 %v311_v37  ;;  %2293 = vrcp.f32 %v562_v40 }
 0x529   :  { %2099 = vmatmul.msk.f32.vlgmr.msra.gmra.mxu0 %vm236_vm6, %v308_v38 }
 0x52a   :  { %v2292_v49 = vpop.eup %2291 }
 0x52b   :  { %v693_v51 = vsel %vm236_vm6, %v2292_v49, 0.0 }
 0x52c   :  { %564 = vadd.xlane.f32.xlu0 %v563_v41 }
 0x52e   :  { %v2294_v52 = vpop.eup %2293 }
 0x52f   :  { %v2227_v43 = vpop.permute.xlu1 %2226  ;;  %v2232_v44 = vpop.permute.xlu2 %2231  ;;  %v568_v55 = vmul.f32 %v2294_v52, %v2644_v15  ;;  %v787_v15 = vld [vmem:[%s3292_s7 + $0x18] sm:$0xff] }
 0x530   :  { %v2234_v45 = vunpack.i.h.bf16 %v2232_v44  ;;  %v2233_v46 = vunpack.i.l.bf16 %v2232_v44  ;;  %v2228_v47 = vunpack.i.l.bf16 %v2227_v43  ;;  %v2229_v48 = vunpack.i.h.bf16 %v2227_v43  ;;  %806 = vmatpush.msrb.mxu2 %v787_v15 }
 0x532   :  { %461 = vmatpush.msrb.mxu0 %v2228_v47  ;;  %487 = vmatpush.msrb.mxu1 %v2229_v48 }
 0x533   :  { %2105 = vmatmul.msk.f32.vlgmr.msrb.gmra.mxu0 %vm236_vm6, %v438_v50  ;;  %807 = vmatpush.msrb.mxu2 %v786_v16 }
 0x534   :  { %617 = vmatpush.msra.mxu1 %v2234_v45  ;;  %591 = vmatpush.msra.mxu0 %v2233_v46 }
 0x535   :  { %694 = vadd.xlane.f32.xlu0 %v693_v51  ;;  %726 = vrot.lane.b32.xlu1 %v2566_v9, %s3303_s30 }
 0x536   :  { %808 = vmatpush.msrb.mxu2 %v785_v18  ;;  %v886_v18 = vld [vmem:[%s3295_s10 + $0x28] sm:$0xff] }
 0x537   :  { %v701_v53 = vpop.permute.xlu2 %700 }
 0x538   :  { %721 = vmatpush.msrb.mxu0 %v701_v53  ;;  %809 = vmatpush.msrb.mxu2 %v784_v17 }
 0x53b   :  { %2111 = vmatmul.msk.f32.vlgmr.msra.gmra.mxu0 %vm236_vm6, %v568_v55 }
 0x58f   :  { %v435_v56 = vpop.xlane.xlu1 %434 }
 0x590   :  { %2295 = vrcp.f32 %v435_v56 }
 0x596   :  { %v2296_v57 = vpop.eup %2295 }
 0x597   :  { %v439_v58 = vmul.f32 %v2296_v57, %v2282_v26  ;;  %v692_v59 = vpop.xlane.xlu0 %691 }
 0x598   :  { %2297 = vrcp.f32 %v692_v59 }
 0x599   :  { %2106 = vmatmul.msk.f32.vlgmr.msrb.gmra.mxu1 %vm236_vm6, %v439_v58 }
 0x59e   :  { %v2298_v60 = vpop.eup %2297 }
 0x59f   :  { %v698_v61 = vmul.f32 %v2298_v60, %v2284_v7  ;;  %v565_v62 = vpop.xlane.xlu0 %564 }
 0x5a0   :  { %2299 = vrcp.f32 %v565_v62  ;;  %v891_v62 = vld [vmem:[%s3295_s10 + $0x50] sm:$0xff] }
 0x5a1   :  { %2117 = vmatmul.msk.f32.vlgmr.msrb.gmra.mxu0 %vm236_vm6, %v698_v61  ;;  %v892_v61 = vld [vmem:[%s3295_s10 + $0x58] sm:$0xff] }
 0x5a2   :  { %951 = vmatpush.msrb.mxu3 %v892_v61  ;;  %v995_v61 = vld [vmem:[%s3297_s12 + $0xb8] sm:$0xff] }
 0x5a4   :  { %952 = vmatpush.msrb.mxu3 %v891_v62  ;;  %v994_v62 = vld [vmem:[%s3297_s12 + $0xb0] sm:$0xff] }
 0x5a6   :  { %v2300_v9 = vpop.eup %2299  ;;  %v333_v1 = vpop.f32.mrf.mxu0 }
 0x5a7   :  { %v727_v63 = vpop.permute.xlu1 %726  ;;  %v569_v0 = vmul.f32 %v2300_v9, %v2288_v39 }
 0x5a8   :  { %v695_v2 = vpop.xlane.xlu0 %694  ;;  %747 = vmatpush.msrb.mxu1 %v727_v63  ;;  %v2249_v63 = vld [vmem:[%s3293_s8] ss:$0 sm:$0xff] }
 0x5a9   :  { %2301 = vrcp.f32 %v695_v2  ;;  %2112 = vmatmul.msk.f32.vlgmr.msra.gmra.mxu1 %vm236_vm6, %v569_v0  ;;  %v890_v0 = vld [vmem:[%s3295_s10 + $0x48] sm:$0xff]  ;;  %v889_v2 = vld [vmem:[%s3295_s10 + $0x40] sm:$0xff] }
 0x5aa   :  { %953 = vmatpush.msrb.mxu3 %v890_v0  ;;  %1059 = vmatpush.msra.mxu1 %v995_v61  ;;  %v991_v0 = vld [vmem:[%s3297_s12 + $0x98] sm:$0xff] }
 0x5ac   :  { %954 = vmatpush.msrb.mxu3 %v889_v2  ;;  %1060 = vmatpush.msra.mxu1 %v994_v62  ;;  %v989_v2 = vld [vmem:[%s3297_s12 + $0x88] sm:$0xff] }
 0x5af   :  { %v2302_v3 = vpop.eup %2301 }
 0x5b0   :  { %v699_v4 = vmul.f32 %v2302_v3, %v2292_v49  ;;  %v463_v5 = vpop.f32.mrf.mxu0 }
 0x5b1   :  { %754 = vrot.lane.b32.xlu0 %v463_v5, %s3305_s0  ;;  %v2250_v5 = vld [vmem:[%s3294_s9] ss:$0 sm:$0xff] }
 0x5b2   :  { %2118 = vmatmul.msk.f32.vlgmr.msrb.gmra.mxu1 %vm236_vm6, %v699_v4 }
 0x5b8   :  { %v593_v6 = vpop.f32.mrf.mxu0 }
 0x5b9   :  { %762 = vrot.lane.b32.xlu2 %v593_v6, %s3309_s17  ;;  %v888_v6 = vld [vmem:[%s3295_s10 + $0x38] sm:$0xff] }
 0x5ba   :  { %955 = vmatpush.msrb.mxu3 %v888_v6 }
 0x613   :  { %v763_v22 = vpop.permute.xlu2 %762 }
 0x616   :  { %v489_v10 = vpop.f32.mrf.mxu1 }
 0x617   :  { %756 = vrot.lane.b32.xlu2 %v489_v10, %s3305_s0 }
 0x61e   :  { %v723_v11 = vpop.f32.mrf.mxu0 }
 0x61f   :  { %770 = vrot.lane.b32.xlu1 %v723_v11, %s3311_s24 }
 0x623   :  { %v755_v19 = vpop.permute.xlu0 %754 }
 0x624   :  { %v776_v21 = vsel %vm236_vm6, %v333_v1, %v755_v19  ;;  %v94_v19 = vlaneseq }
 0x625   :  { %v779_v24 = vsel %vm778_vm7, %v776_v21, %v763_v22  ;;  %v885_v22 = vld [vmem:[%s3295_s10 + $0x20] sm:$0xff] }
 0x626   :  { %v619_v13 = vpop.f32.mrf.mxu1 }
 0x627   :  { %764 = vrot.lane.b32.xlu1 %v619_v13, %s3309_s17 }
 0x62f   :  { %v749_v14 = vpop.f32.mrf.mxu1 }
 0x630   :  { %772 = vrot.lane.b32.xlu0 %v749_v14, %s3311_s24  ;;  %v887_v14 = vld [vmem:[%s3295_s10 + $0x30] sm:$0xff]  ;;  %s3333_s24 = smov 24  }
 0x631   :  { %956 = vmatpush.msrb.mxu3 %v887_v14  ;;  %v985_v14 = vld [vmem:[%s3297_s12 + $0x68] sm:$0xff] }
 0x633   :  { %957 = vmatpush.msrb.mxu3 %v886_v18  ;;  %v982_v18 = vld [vmem:[%s3297_s12 + $0x50] sm:$0xff] }
 0x635   :  { %958 = vmatpush.msrb.mxu3 %v885_v22 }
 0x671   :  { %v757_v26 = vpop.permute.xlu2 %756 }
 0x672   :  { %v777_v28 = vsel %vm236_vm6, %v2631_v54, %v757_v26 }
 0x691   :  { %v771_v23 = vpop.permute.xlu1 %770 }
 0x692   :  { %v782_v25 = vsel %vm781_vm8, %v779_v24, %v771_v23 }
 0x693   :  { %2119 = vmatmul.msk.f32.vlgmr.msrb.gmra.mxu2 %vm62_vm0, %v782_v25  ;;  %v884_v25 = vld [vmem:[%s3295_s10 + $0x18] sm:$0xff] }
 0x694   :  { %959 = vmatpush.msrb.mxu3 %v884_v25 }
 0x699   :  { %v765_v27 = vpop.permute.xlu1 %764 }
 0x69a   :  { %v780_v29 = vsel %vm778_vm7, %v777_v28, %v765_v27  ;;  %v2753_v27 = vshrl.u32 %v94_v19, 7  ;;  %v980_v19 = vld [vmem:[%s3297_s12 + $0x40] sm:$0xff] }
 0x69c   :  { %v96_v28 = vadd.s32 8, %v2753_v27  ;;  %vm907_vm14 = vcmp.lt.s32.totalorder %v2753_v27, 7  ;;  %vm896_vm1 = vcmp.lt.s32.totalorder %v2753_v27, 1 }
 0x6a2   :  { %v773_v30 = vpop.permute.xlu0 %772 }
 0x6a3   :  { %v783_v31 = vsel %vm781_vm8, %v780_v29, %v773_v30 }
 0x6a4   :  { %2120 = vmatmul.msk.f32.gmra.mxu2 %vm62_vm0, %v783_v31  ;;  %v108_v31 = vand.u32 7, %v96_v28 }
 0x6a6   :  { %vm2758_vm13 = vcmp.ne.s32.totalorder %v108_v31, 7  ;;  %vm2801_vm5 = vcmp.ne.s32.totalorder %v108_v31, 0 }
 0x716   :  { %v811_v32 = vpop.f32.mrf.mxu2 }
 0x717   :  { %v2700_v7 = vadd.f32 %v811_v32, %v2521_v8  ;;  %v101_v32 = vand.u32 7, %v2753_v27 }
 0x719   :  { %v821_v33 = vsel %vm62_vm0, %v2700_v7, 0.0  ;;  %vm2763_vm15 = vcmp.ne.s32.totalorder %v101_v32, 7  ;;  %vm2792_vm2 = vcmp.ne.s32.totalorder %v101_v32, 0  ;;  %v976_v32 = vld [vmem:[%s3297_s12 + $0x20] sm:$0xff] }
 0x71a   :  { %822 = vadd.xlane.f32.xlu2 %v821_v33 }
 0x727   :  { %v814_v34 = vpop.f32.mrf.mxu2 }
 0x728   :  { %v2705_v35 = vadd.f32 %v814_v34, %v2528_v12 }
 0x72a   :  { %v824_v54 = vsel %vm62_vm0, %v2705_v35, 0.0 }
 0x72b   :  { %825 = vadd.xlane.f32.xlu1 %v824_v54 }
 0x78d   :  { %v823_v36 = vpop.xlane.xlu2 %822 }
 0x78e   :  { %v827_v37 = vmul.f32 %v823_v36, %v2532_v20 }
 0x790   :  { %v829_v38 = vsub.f32 %v2700_v7, %v827_v37 }
 0x792   :  { %v831_v39 = vmul.f32 %v829_v38, %v829_v38  ;;  %v872_v4 = vmul.f32 %v2249_v63, %v829_v38 }
 0x794   :  { %v833_v8 = vsel %vm62_vm0, %v831_v39, 0.0 }
 0x795   :  { %834 = vadd.xlane.f32.xlu0 %v833_v8 }
 0x79e   :  { %v826_v40 = vpop.xlane.xlu1 %825 }
 0x79f   :  { %v828_v41 = vmul.f32 %v826_v40, %v2532_v20 }
 0x7a1   :  { %v2714_v42 = vsub.f32 %v2705_v35, %v828_v41 }
 0x7a3   :  { %v832_v12 = vmul.f32 %v2714_v42, %v2714_v42  ;;  %v873_v29 = vmul.f32 %v2249_v63, %v2714_v42  ;;  %v992_v63 = vld [vmem:[%s3297_s12 + $0xa0] sm:$0xff] }
 0x7a5   :  { %v836_v43 = vsel %vm62_vm0, %v832_v12, 0.0 }
 0x7a6   :  { %837 = vadd.xlane.f32.xlu2 %v836_v43 }
 0x808   :  { %v835_v44 = vpop.xlane.xlu0 %834 }
 0x809   :  { %v839_v45 = vmul.f32 0.032258064, %v835_v44 }
 0x80b   :  { %2303 = vrsqrt.f32 %v839_v45  ;;  %vm848_vm9 = vcmp.eq.f32.partialorder %v839_v45, inf  ;;  %v851_v56 = vand.u32 2147483648, %v839_v45  ;;  %vm850_vm10 = vcmp.eq.f32.partialorder %v839_v45, 0.0 }
 0x811   :  { %v2304_v46 = vpop.eup %2303 }
 0x812   :  { %v842_v47 = vmul.f32 %v2304_v46, %v839_v45 }
 0x814   :  { %v843_v48 = vmul.f32 %v2304_v46, %v842_v47  ;;  %v881_v47 = vld [vmem:[%s3295_s10] sm:$0xff] }
 0x816   :  { %v844_v49 = vmul.f32 0.5, %v843_v48 }
 0x818   :  { %v845_v51 = vsub.f32 1.5, %v844_v49 }
 0x819   :  { %v838_v50 = vpop.xlane.xlu2 %837 }
 0x81a   :  { %v840_v52 = vmul.f32 0.032258064, %v838_v50  ;;  %v846_v53 = vmul.f32 %v2304_v46, %v845_v51  ;;  %v882_v46 = vld [vmem:[%s3295_s10 + $0x8] sm:$0xff] }
 0x81c   :  { %2305 = vrsqrt.f32 %v840_v52  ;;  %v847_v55 = vmul.f32 %v846_v53, %v839_v45  ;;  %vm860_vm11 = vcmp.eq.f32.partialorder %v840_v52, inf  ;;  %v863_v21 = vand.u32 2147483648, %v840_v52 }
 0x81d   :  { %vm862_vm12 = vcmp.eq.f32.partialorder %v840_v52, 0.0 }
 0x81e   :  { %v849_v57 = vsel %vm848_vm9, %v839_v45, %v847_v55  ;;  %v883_v45 = vld [vmem:[%s3295_s10 + $0x10] sm:$0xff] }
 0x81f   :  { %v852_v58 = vsel %vm850_vm10, %v851_v56, %v849_v57  ;;  %960 = vmatpush.msrb.mxu3 %v883_v45 }
 0x820   :  { %v865_v59 = vadd.f32 1e-06, %v852_v58 }
 0x821   :  { %961 = vmatpush.msrb.mxu3 %v882_v46 }
 0x822   :  { %v2306_v60 = vpop.eup %2305  ;;  %2307 = vrcp.f32 %v865_v59 }
 0x823   :  { %v854_v9 = vmul.f32 %v2306_v60, %v840_v52  ;;  %962 = vmatpush.msrb.mxu3 %v881_v47 }
 0x825   :  { %v855_v1 = vmul.f32 %v2306_v60, %v854_v9  ;;  %v993_v9 = vld [vmem:[%s3297_s12 + $0xa8] sm:$0xff] }
 0x826   :  { %1061 = vmatpush.msra.mxu1 %v993_v9 }
 0x827   :  { %v856_v3 = vmul.f32 0.5, %v855_v1  ;;  %v990_v1 = vld [vmem:[%s3297_s12 + $0x90] sm:$0xff] }
 0x828   :  { %v2308_v10 = vpop.eup %2307  ;;  %1062 = vmatpush.msra.mxu1 %v992_v63 }
 0x829   :  { %v857_v11 = vsub.f32 1.5, %v856_v3  ;;  %v874_v13 = vmul.f32 %v2308_v10, %v872_v4  ;;  %v988_v3 = vld [vmem:[%s3297_s12 + $0x80] sm:$0xff] }
 0x82a   :  { %1063 = vmatpush.msra.mxu1 %v991_v0  ;;  %v2251_v4 = vld [vmem:[%s3296_s11] ss:$0 sm:$0xff] }
 0x82b   :  { %v858_v15 = vmul.f32 %v2306_v60, %v857_v11  ;;  %v879_v16 = vadd.f32 %v2250_v5, %v874_v13  ;;  %v987_v11 = vld [vmem:[%s3297_s12 + $0x78] sm:$0xff]  ;;  %v986_v13 = vld [vmem:[%s3297_s12 + $0x70] sm:$0xff] }
 0x82c   :  { %1064 = vmatpush.msra.mxu1 %v990_v1  ;;  %1028 = vmatpush.msra.mxu0 %v987_v11  ;;  %v2130_v11 = vld [vmem:[%s3291_s6 + $0x38] sm:$0xff] }
 0x82d   :  { %v859_v17 = vmul.f32 %v858_v15, %v840_v52  ;;  %918 = vrot.lane.b32.xlu1 %v879_v16, %s3313_s28  ;;  %v894_v37 = vrot.slane %v879_v16, 7  ;;  %v905_v39 = vrot.slane %v879_v16, 1  ;;  %v984_v15 = vld [vmem:[%s3297_s12 + $0x60] sm:$0xff]  ;;  %v983_v16 = vld [vmem:[%s3297_s12 + $0x58] sm:$0xff]  ;;  %1163 = vmatpush.msra.mxu2 %v2130_v11 }
 0x82e   :  { %1065 = vmatpush.msra.mxu1 %v989_v2  ;;  %1029 = vmatpush.msra.mxu0 %v986_v13  ;;  %v2129_v13 = vld [vmem:[%s3291_s6 + $0x30] sm:$0xff] }
 0x82f   :  { %v861_v23 = vsel %vm860_vm11, %v840_v52, %v859_v17  ;;  %v981_v17 = vld [vmem:[%s3297_s12 + $0x48] sm:$0xff]  ;;  %1164 = vmatpush.msra.mxu2 %v2129_v13 }
 0x830   :  { %v864_v24 = vsel %vm862_vm12, %v863_v21, %v861_v23  ;;  %1066 = vmatpush.msra.mxu1 %v988_v3  ;;  %1030 = vmatpush.msra.mxu0 %v985_v14  ;;  %v979_v21 = vld [vmem:[%s3297_s12 + $0x38] sm:$0xff]  ;;  %v2128_v14 = vld [vmem:[%s3291_s6 + $0x28] sm:$0xff] }
 0x831   :  { %v866_v26 = vadd.f32 1e-06, %v864_v24  ;;  %v978_v24 = vld [vmem:[%s3297_s12 + $0x30] sm:$0xff]  ;;  %1165 = vmatpush.msra.mxu2 %v2128_v14 }
 0x832   :  { %1031 = vmatpush.msra.mxu0 %v984_v15 }
 0x833   :  { %2309 = vrcp.f32 %v866_v26  ;;  %v977_v26 = vld [vmem:[%s3297_s12 + $0x28] sm:$0xff] }
 0x834   :  { %1032 = vmatpush.msra.mxu0 %v983_v16 }
 0x836   :  { %1033 = vmatpush.msra.mxu0 %v982_v18  ;;  %v2127_v18 = vld [vmem:[%s3291_s6 + $0x20] sm:$0xff] }
 0x837   :  { %1166 = vmatpush.msra.mxu2 %v2127_v18 }
 0x838   :  { %1034 = vmatpush.msra.mxu0 %v981_v17 }
 0x839   :  { %v2310_v30 = vpop.eup %2309 }
 0x83a   :  { %v875_v33 = vmul.f32 %v2310_v30, %v873_v29  ;;  %1035 = vmatpush.msra.mxu0 %v980_v19 }
 0x83c   :  { %v880_v34 = vadd.f32 %v2250_v5, %v875_v33  ;;  %1036 = vmatpush.msra.mxu0 %v979_v21 }
 0x83e   :  { %920 = vrot.lane.b32.xlu0 %v880_v34, %s3313_s28  ;;  %v895_v38 = vrot.slane %v880_v34, 7  ;;  %v906_v8 = vrot.slane %v880_v34, 1  ;;  %1037 = vmatpush.msra.mxu0 %v978_v24  ;;  %v975_v34 = vld [vmem:[%s3297_s12 + $0x18] sm:$0xff] }
 0x840   :  { %v909_v40 = vsel %vm907_vm14, %v906_v8, %v905_v39  ;;  %v908_v41 = vsel %vm907_vm14, %v905_v39, %v906_v8  ;;  %v898_v42 = vsel %vm896_vm1, %v895_v38, %v894_v37  ;;  %v897_v12 = vsel %vm896_vm1, %v894_v37, %v895_v38  ;;  %1038 = vmatpush.msra.mxu0 %v977_v26  ;;  %v974_v8 = vld [vmem:[%s3297_s12 + $0x10] sm:$0xff] }
 0x841   :  { %v915_v43 = vsel %vm2758_vm13, %v909_v40, 0.0  ;;  %v914_v44 = vsel %vm2763_vm15, %v908_v41, 0.0  ;;  %v903_v50 = vsel %vm2792_vm2, %v898_v42, 0.0  ;;  %v904_v57 = vsel %vm2801_vm5, %v897_v12, 0.0  ;;  %v973_v40 = vld [vmem:[%s3297_s12 + $0x8] sm:$0xff]  ;;  %v972_v12 = vld [vmem:[%s3297_s12] sm:$0xff] }
 0x842   :  { %928 = vrot.lane.b32.xlu1 %v915_v43, %s2398_s20  ;;  %926 = vrot.lane.b32.xlu2 %v914_v44, %s2398_s20 }
 0x843   :  { %1039 = vmatpush.msra.mxu0 %v976_v32 }
 0x845   :  { %1040 = vmatpush.msra.mxu0 %v975_v34 }
 0x847   :  { %1041 = vmatpush.msra.mxu0 %v974_v8 }
 0x849   :  { %1042 = vmatpush.msra.mxu0 %v973_v40 }
 0x84b   :  { %1043 = vmatpush.msra.mxu0 %v972_v12 }
 0x89c   :  { %v927_v51 = vpop.permute.xlu2 %926 }
 0x89f   :  { %v919_v49 = vpop.permute.xlu1 %918 }
 0x8a0   :  { %v932_v52 = vsel %vm62_vm0, %v903_v50, %v919_v49  ;;  %v2252_v50 = vld [vmem:[%s3298_s13] ss:$0 sm:$0xff] }
 0x8a1   :  { %v935_v53 = vsel %vm934_vm3, %v932_v52, %v927_v51 }
 0x8a2   :  { %2121 = vmatmul.msk.f32.vlgmr.msrb.gmra.mxu3 %vm940_vm4, %v935_v53 }
 0x8b0   :  { %v921_v56 = vpop.permute.xlu0 %920 }
 0x8b1   :  { %v933_v58 = vsel %vm62_vm0, %v904_v57, %v921_v56 }
 0x8b4   :  { %v929_v59 = vpop.permute.xlu1 %928 }
 0x8b5   :  { %v936_v60 = vsel %vm934_vm3, %v933_v58, %v929_v59 }
 0x8b6   :  { %2122 = vmatmul.msk.f32.gmra.mxu3 %vm940_vm4, %v936_v60 }
 0x925   :  { %v964_v5 = vpop.f32.mrf.mxu3 }
 0x926   :  { %v965_v6 = vadd.f32 %v2251_v4, %v964_v5 }
 0x928   :  { %v970_v10 = vmax.f32 %v965_v6, 0.0 }
 0x92a   :  { %1011 = vrot.lane.b32.xlu0 %v970_v10, %s2398_s20  ;;  %v997_v28 = vrot.slane %v970_v10, 7  ;;  %v1003_v29 = vrot.slane %v970_v10, 1 }
 0x939   :  { %v967_v22 = vpop.f32.mrf.mxu3 }
 0x93a   :  { %v968_v23 = vadd.f32 %v2251_v4, %v967_v22 }
 0x93c   :  { %v971_v25 = vmax.f32 %v968_v23, 0.0 }
 0x93e   :  { %v998_v30 = vrot.slane %v971_v25, 7  ;;  %v1004_v31 = vrot.slane %v971_v25, 1  ;;  %1013 = vrot.lane.b32.xlu0 %v971_v25, %s2398_s20 }
 0x940   :  { %v1005_v33 = vsel %vm907_vm14, %v1003_v29, %v1004_v31  ;;  %v1000_v37 = vsel %vm896_vm1, %v998_v30, %v997_v28  ;;  %v999_v38 = vsel %vm896_vm1, %v997_v28, %v998_v30  ;;  %v1006_v41 = vsel %vm907_vm14, %v1004_v31, %v1003_v29 }
 0x941   :  { %v1007_v39 = vsel %vm2763_vm15, %v1005_v33, 0.0  ;;  %v1008_v42 = vsel %vm2758_vm13, %v1006_v41, 0.0  ;;  %v1001_v43 = vsel %vm2792_vm2, %v1000_v37, 0.0  ;;  %v1002_v47 = vsel %vm2801_vm5, %v999_v38, 0.0  ;;  %v2253_v33 = vld [vmem:[%s3289_s4 + $0x1] ss:$0 sm:$0xff] }
 0x942   :  { %2123 = vmatmul.msk.f32.vlgmr.msra.gmra.mxu1 %vm934_vm3, %v1007_v39  ;;  %v2254_v39 = vld [vmem:[%s3290_s5 + $0x1] ss:$0 sm:$0xff] }
 0x94a   :  { %2124 = vmatmul.msk.f32.gmra.mxu1 %vm934_vm3, %v1008_v42 }
 0x99c   :  { %v1012_v44 = vpop.permute.xlu0 %1011 }
 0x99d   :  { %v1017_v45 = vsel %vm934_vm3, %v1001_v43, %v1012_v44 }
 0x99e   :  { %1044 = vmatmul.f32.vlgmr.msra.gmra.mxu0 %v1017_v45 }
 0x9b0   :  { %v1014_v46 = vpop.permute.xlu0 %1013 }
 0x9b1   :  { %v1018_v49 = vsel %vm934_vm3, %v1002_v47, %v1014_v46 }
 0x9b2   :  { %1047 = vmatmul.f32.gmra.mxu0 %v1018_v49 }
 0x9bf   :  { %v1068_v53 = vpop.f32.mrf.mxu1 }
 0x9c7   :  { %v1071_v61 = vpop.f32.mrf.mxu1 }
 0xa1b   :  { %v1045_v51 = vpop.f32.mrf.mxu0 }
 0xa1c   :  { %v1046_v52 = vadd.f32 %v2252_v50, %v1045_v51 }
 0xa1e   :  { %v1069_v56 = vadd.f32 %v1068_v53, %v1046_v52 }
 0xa20   :  { %v2911_v57 = vadd.f32 %v1069_v56, %v2700_v7 }
 0xa22   :  { %v1080_v58 = vsel %vm62_vm0, %v2911_v57, 0.0 }
 0xa23   :  { %1081 = vadd.xlane.f32.xlu2 %v1080_v58 }
 0xa2f   :  { %v1048_v59 = vpop.f32.mrf.mxu0 }
 0xa30   :  { %v1049_v60 = vadd.f32 %v2252_v50, %v1048_v59 }
 0xa32   :  { %v1072_v62 = vadd.f32 %v1071_v61, %v1049_v60 }
 0xa34   :  { %v2916_v9 = vadd.f32 %v1072_v62, %v2705_v35 }
 0xa36   :  { %v1083_v63 = vsel %vm62_vm0, %v2916_v9, 0.0 }
 0xa37   :  { %1084 = vadd.xlane.f32.xlu0 %v1083_v63 }
 0xa96   :  { %v1082_v0 = vpop.xlane.xlu2 %1081 }
 0xa97   :  { %v1086_v1 = vmul.f32 %v1082_v0, %v2532_v20 }
 0xa99   :  { %v1088_v7 = vsub.f32 %v2911_v57, %v1086_v1 }
 0xa9b   :  { %v1090_v2 = vmul.f32 %v1088_v7, %v1088_v7  ;;  %v1131_v38 = vmul.f32 %v2253_v33, %v1088_v7 }
 0xa9d   :  { %v1092_v3 = vsel %vm62_vm0, %v1090_v2, 0.0 }
 0xa9e   :  { %1093 = vadd.xlane.f32.xlu1 %v1092_v3 }
 0xaaa   :  { %v1085_v4 = vpop.xlane.xlu0 %1084 }
 0xaab   :  { %v1087_v5 = vmul.f32 %v1085_v4, %v2532_v20  ;;  %v2367_v4 = vld [vmem:[%s3286_s1] ss:$0 sm:$0xff] }
 0xaad   :  { %v1089_v6 = vsub.f32 %v2916_v9, %v1087_v5 }
 0xaaf   :  { %v1091_v35 = vmul.f32 %v1089_v6, %v1089_v6  ;;  %v1132_v51 = vmul.f32 %v2253_v33, %v1089_v6 }
 0xab1   :  { %v1095_v10 = vsel %vm62_vm0, %v1091_v35, 0.0 }
 0xab2   :  { %1096 = vadd.xlane.f32.xlu1 %v1095_v10  ;;  %v2996_v10 = vld [vmem:[%s3286_s1 + $0x1] ss:$0 sm:$0xff]  ;;  %s3329_s1 = smov 48  }
 0xb11   :  { %v1094_v15 = vpop.xlane.xlu1 %1093 }
 0xb12   :  { %v1098_v16 = vmul.f32 0.032258064, %v1094_v15 }
 0xb14   :  { %2311 = vrsqrt.f32 %v1098_v16  ;;  %vm1107_vm9 = vcmp.eq.f32.partialorder %v1098_v16, inf  ;;  %v1110_v29 = vand.u32 2147483648, %v1098_v16  ;;  %vm1109_vm10 = vcmp.eq.f32.partialorder %v1098_v16, 0.0 }
 0xb1a   :  { %v2312_v17 = vpop.eup %2311 }
 0xb1b   :  { %v1101_v19 = vmul.f32 %v2312_v17, %v1098_v16 }
 0xb1d   :  { %v1102_v21 = vmul.f32 %v2312_v17, %v1101_v19 }
 0xb1f   :  { %v1103_v22 = vmul.f32 0.5, %v1102_v21 }
 0xb21   :  { %v1104_v23 = vsub.f32 1.5, %v1103_v22 }
 0xb23   :  { %v1105_v24 = vmul.f32 %v2312_v17, %v1104_v23 }
 0xb25   :  { %v1097_v25 = vpop.xlane.xlu1 %1096  ;;  %v1106_v26 = vmul.f32 %v1105_v24, %v1098_v16 }
 0xb26   :  { %v1099_v28 = vmul.f32 0.032258064, %v1097_v25 }
 0xb27   :  { %v1108_v30 = vsel %vm1107_vm9, %v1098_v16, %v1106_v26 }
 0xb28   :  { %2313 = vrsqrt.f32 %v1099_v28  ;;  %v1111_v31 = vsel %vm1109_vm10, %v1110_v29, %v1108_v30  ;;  %vm1119_vm11 = vcmp.eq.f32.partialorder %v1099_v28, inf  ;;  %v1122_v46 = vand.u32 2147483648, %v1099_v28 }
 0xb29   :  { %v1124_v32 = vadd.f32 1e-06, %v1111_v31  ;;  %vm1121_vm12 = vcmp.eq.f32.partialorder %v1099_v28, 0.0 }
 0xb2b   :  { %2315 = vrcp.f32 %v1124_v32 }
 0xb2e   :  { %v2314_v34 = vpop.eup %2313 }
 0xb2f   :  { %v1113_v37 = vmul.f32 %v2314_v34, %v1099_v28 }
 0xb31   :  { %v1114_v8 = vmul.f32 %v2314_v34, %v1113_v37  ;;  %v2316_v40 = vpop.eup %2315 }
 0xb32   :  { %v1133_v41 = vmul.f32 %v2316_v40, %v1131_v38 }
 0xb33   :  { %v1115_v42 = vmul.f32 0.5, %v1114_v8 }
 0xb34   :  { %v1138_v12 = vadd.f32 %v2254_v39, %v1133_v41 }
 0xb35   :  { %v1116_v43 = vsub.f32 1.5, %v1115_v42 }
 0xb36   :  { %2131 = vmatmul.msk.f32.vlgmr.msra.gmra.mxu2 %vm62_vm0, %v1138_v12 }
 0xb37   :  { %v1117_v44 = vmul.f32 %v2314_v34, %v1116_v43 }
 0xb39   :  { %v1118_v45 = vmul.f32 %v1117_v44, %v1099_v28 }
 0xb3b   :  { %v1120_v47 = vsel %vm1119_vm11, %v1099_v28, %v1118_v45 }
 0xb3c   :  { %v1123_v49 = vsel %vm1121_vm12, %v1122_v46, %v1120_v47 }
 0xb3d   :  { %v1125_v50 = vadd.f32 1e-06, %v1123_v49 }
 0xb3f   :  { %2317 = vrcp.f32 %v1125_v50 }
 0xb45   :  { %v2318_v52 = vpop.eup %2317 }
 0xb46   :  { %v1134_v53 = vmul.f32 %v2318_v52, %v1132_v51 }
 0xb48   :  { %v1139_v56 = vadd.f32 %v2254_v39, %v1134_v53 }
 0xb4a   :  { %2132 = vmatmul.msk.f32.gmra.mxu2 %vm62_vm0, %v1139_v56 }
 0xbb9   :  { %v2946_v58 = vpop.f32.mrf.mxu2 }
 0xbba   :  { %1175 = vrot.lane.b32.xlu2 %v2946_v58, %s2396_s18  ;;  %1250 = vrot.lane.b32.xlu1 %v2946_v58, %s2398_s20 }
 0xbc2   :  { %1304 = vrot.lane.b32.xlu2 %v2946_v58, %s2397_s19 }
 0xbca   :  { %1302 = vrot.lane.b32.xlu2 %v2946_v58, %s2400_s21 }
 0xbcd   :  { %v2956_v59 = vpop.f32.mrf.mxu2 }
 0xbce   :  { %1202 = vrot.lane.b32.xlu0 %v2956_v59, %s2396_s18  ;;  %s3327_s18 = smov 72   ;;  %v3003_v17 = vpack.i.bf16 %v2956_v59, %v2946_v58 }
 0xbd2   :  { %1434 = vrot.lane.b32.xlu2 %v2946_v58, %s2402_s22 }
 0xbd6   :  { %1332 = vrot.lane.b32.xlu0 %v2956_v59, %s2397_s19 }
 0xbda   :  { %1432 = vrot.lane.b32.xlu2 %v2946_v58, %s2399_s2 }
 0xbde   :  { %1330 = vrot.lane.b32.xlu0 %v2956_v59, %s2400_s21  ;;  %s3328_s21 = smov 56  }
 0xbe2   :  { %1460 = vrot.lane.b32.xlu2 %v2956_v59, %s2399_s2 }
 0xbe6   :  { %1462 = vrot.lane.b32.xlu0 %v2956_v59, %s2402_s22  ;;  %s3330_s22 = smov 40  }
 0xbea   :  { %1590 = vrot.lane.b32.xlu2 %v2956_v59, %s2403_s23 }
 0xbee   :  { %1562 = vrot.lane.b32.xlu0 %v2946_v58, %s2403_s23  ;;  %s3331_s23 = smov 8  }
 0xc14   :  { %v1176_v60 = vpop.permute.xlu2 %1175 }
 0xc15   :  { %2133 = vmatpush.xpose.msk.msrb.mxu1 %vm236_vm6, %v1176_v60 }
 0xc18   :  { %2134 = vmatmul.msk.f32.vlgmr.msrb.gmra.mxu1 %vm236_vm6, %v2946_v58 }
 0xc1c   :  { %v1305_v62 = vpop.permute.xlu2 %1304 }
 0xc24   :  { %v1303_v63 = vpop.permute.xlu2 %1302 }
 0xc2c   :  { %v1251_v61 = vpop.permute.xlu1 %1250  ;;  %v1435_v1 = vpop.permute.xlu2 %1434 }
 0xc2d   :  { %1271 = vmatpush.msra.mxu3 %v1251_v61 }
 0xc34   :  { %v1433_v2 = vpop.permute.xlu2 %1432 }
 0xc3c   :  { %v1461_v40 = vpop.permute.xlu2 %1460 }
 0xc40   :  { %v1203_v0 = vpop.permute.xlu0 %1202 }
 0xc41   :  { %2135 = vmatpush.xpose.msk.msrb.mxu2 %vm236_vm6, %v1203_v0 }
 0xc44   :  { %2136 = vmatmul.msk.f32.vlgmr.msrb.gmra.mxu2 %vm236_vm6, %v2956_v59  ;;  %v1591_v42 = vpop.permute.xlu2 %1590 }
 0xc45   :  { %2139 = vmatpush.xpose.msk.msra.mxu2 %vm236_vm6, %v1305_v62 }
 0xc48   :  { %v1333_v7 = vpop.permute.xlu0 %1332 }
 0xc49   :  { %2145 = vmatpush.xpose.msk.msrb.mxu2 %vm236_vm6, %v1435_v1  ;;  %2141 = vmatpush.xpose.msk.msrb.mxu3 %vm236_vm6, %v1333_v7 }
 0xc4c   :  { %2140 = vmatmul.msk.f32.vlgmr.msra.gmra.mxu2 %vm236_vm6, %v1303_v63 }
 0xc50   :  { %v1331_v23 = vpop.permute.xlu0 %1330 }
 0xc54   :  { %2146 = vmatmul.msk.f32.vlgmr.msrb.gmra.mxu2 %vm236_vm6, %v1433_v2 }
 0xc58   :  { %v1463_v26 = vpop.permute.xlu0 %1462 }
 0xc60   :  { %v1563_v29 = vpop.permute.xlu0 %1562 }
 0xc95   :  { %v1198_v3 = vpop.f32.mrf.mxu1 }
 0xc96   :  { %v1199_v5 = vadd.f32 %v2367_v4, %v1198_v3 }
 0xc98   :  { %v1228_v6 = vsel %vm236_vm6, %v1199_v5, -inf }
 0xc99   :  { %1229 = vmax.xlane.f32.xlu1 %v1228_v6 }
 0xcb2   :  { %1564 = vrot.lane.b32.xlu1 %v2946_v58, %s3327_s18 }
 0xcc7   :  { %v1225_v35 = vpop.f32.mrf.mxu2 }
 0xcc8   :  { %v1226_v11 = vadd.f32 %v2996_v10, %v1225_v35 }
 0xcca   :  { %v1231_v13 = vsel %vm236_vm6, %v1226_v11, -inf }
 0xccb   :  { %1232 = vmax.xlane.f32.xlu0 %v1231_v13 }
 0xccf   :  { %v1327_v14 = vpop.f32.mrf.mxu2 }
 0xcd0   :  { %v1328_v31 = vadd.f32 %v2367_v4, %v1327_v14 }
 0xcd2   :  { %v1358_v33 = vsel %vm236_vm6, %v1328_v31, -inf }
 0xcd7   :  { %v1457_v15 = vpop.f32.mrf.mxu2 }
 0xcd8   :  { %v1458_v16 = vadd.f32 %v2367_v4, %v1457_v15 }
 0xcda   :  { %v1488_v18 = vsel %vm236_vm6, %v1458_v16, -inf }
 0xcdb   :  { %1489 = vmax.xlane.f32.xlu0 %v1488_v18 }
 0xcef   :  { %2236 = vrot.lane.b32.xlu0 %v3003_v17, %s3328_s21 }
 0xd0c   :  { %v1230_v19 = vpop.xlane.xlu1 %1229 }
 0xd0d   :  { %v1234_v21 = vsub.f32 %v1199_v5, %v1230_v19 }
 0xd0f   :  { %v1236_v22 = vmul.f32 1.442695, %v1234_v21 }
 0xd11   :  { %2319 = vpow2.f32 %v1236_v22 }
 0xd17   :  { %v2320_v24 = vpop.eup %2319 }
 0xd18   :  { %v1240_v25 = vsel %vm236_vm6, %v2320_v24, 0.0 }
 0xd19   :  { %1241 = vadd.xlane.f32.xlu1 %v1240_v25 }
 0xd24   :  { %v1565_v28 = vpop.permute.xlu1 %1564 }
 0xd25   :  { %2151 = vmatpush.xpose.msk.msra.mxu2 %vm236_vm6, %v1565_v28 }
 0xd28   :  { %2152 = vmatmul.msk.f32.vlgmr.msra.gmra.mxu2 %vm236_vm6, %v1563_v29 }
 0xd32   :  { %1592 = vrot.lane.b32.xlu1 %v2956_v59, %s3327_s18  ;;  %s3334_s18 = smov 32  }
 0xd3e   :  { %v1233_v30 = vpop.xlane.xlu0 %1232 }
 0xd3f   :  { %v1235_v46 = vsub.f32 %v1226_v11, %v1233_v30 }
 0xd41   :  { %v1238_v51 = vmul.f32 1.442695, %v1235_v46 }
 0xd4e   :  { %v1490_v32 = vpop.xlane.xlu0 %1489 }
 0xd4f   :  { %v1494_v61 = vsub.f32 %v1458_v16, %v1490_v32 }
 0xd51   :  { %v1496_v0 = vmul.f32 1.442695, %v1494_v61 }
 0xd5c   :  { %1359 = vmax.xlane.f32.xlu1 %v1358_v33 }
 0xd61   :  { %v3013_v34 = vpop.permute.xlu0 %2236 }
 0xd62   :  { %v2238_v37 = vunpack.i.l.bf16 %v3013_v34 }
 0xd64   :  { %1401 = vmatpush.msrb.mxu0 %v2238_v37 }
 0xd8c   :  { %v1242_v38 = vpop.xlane.xlu1 %1241 }
 0xd8d   :  { %2321 = vrcp.f32 %v1242_v38 }
 0xd8e   :  { %2323 = vpow2.f32 %v1238_v51 }
 0xd93   :  { %v2322_v39 = vpop.eup %2321 }
 0xd94   :  { %v1248_v8 = vmul.f32 %v2322_v39, %v2320_v24  ;;  %v2324_v1 = vpop.eup %2323 }
 0xd96   :  { %2137 = vmatmul.msk.f32.vlgmr.msra.gmra.mxu3 %vm236_vm6, %v1248_v8 }
 0xd97   :  { %2147 = vmatpush.xpose.msk.msra.mxu3 %vm236_vm6, %v1463_v26 }
 0xd9e   :  { %2142 = vmatmul.msk.f32.vlgmr.msrb.gmra.mxu3 %vm236_vm6, %v1331_v23 }
 0xda4   :  { %v1593_v41 = vpop.permute.xlu1 %1592 }
 0xda5   :  { %2153 = vmatpush.xpose.msk.msrb.mxu3 %vm236_vm6, %v1593_v41 }
 0xda6   :  { %2148 = vmatmul.msk.f32.vlgmr.msra.gmra.mxu3 %vm236_vm6, %v1461_v40  ;;  %v2239_v40 = vunpack.i.h.bf16 %v3013_v34 }
 0xdab   :  { %v1587_v50 = vpop.f32.mrf.mxu2 }
 0xdac   :  { %v1588_v52 = vadd.f32 %v2367_v4, %v1587_v50  ;;  %v1243_v4 = vsel %vm236_vm6, %v2324_v1, 0.0 }
 0xdae   :  { %2154 = vmatmul.msk.f32.vlgmr.msrb.gmra.mxu3 %vm236_vm6, %v1591_v42  ;;  %v1618_v63 = vsel %vm236_vm6, %v1588_v52, -inf }
 0xdcf   :  { %v1360_v43 = vpop.xlane.xlu1 %1359 }
 0xdd0   :  { %v1364_v47 = vsub.f32 %v1328_v31, %v1360_v43 }
 0xdd2   :  { %v1366_v53 = vmul.f32 1.442695, %v1364_v47 }
 0xdd4   :  { %2325 = vpow2.f32 %v1366_v53 }
 0xdd5   :  { %2327 = vpow2.f32 %v1496_v0 }
 0xdda   :  { %v2326_v2 = vpop.eup %2325 }
 0xddb   :  { %v1370_v6 = vsel %vm236_vm6, %v2326_v2, 0.0  ;;  %v2328_v35 = vpop.eup %2327 }
 0xddc   :  { %v1500_v11 = vsel %vm236_vm6, %v2328_v35, 0.0 }
 0xe19   :  { %v3022_v12 = vpop.f32.mrf.mxu3 }
 0xe21   :  { %v1355_v44 = vpop.f32.mrf.mxu3 }
 0xe22   :  { %v1356_v45 = vadd.f32 %v2996_v10, %v1355_v44 }
 0xe24   :  { %v1361_v49 = vsel %vm236_vm6, %v1356_v45, -inf }
 0xe25   :  { %1362 = vmax.xlane.f32.xlu2 %v1361_v49 }
 0xe29   :  { %v1485_v56 = vpop.f32.mrf.mxu3 }
 0xe2a   :  { %v1486_v60 = vadd.f32 %v2996_v10, %v1485_v56 }
 0xe2c   :  { %v1491_v62 = vsel %vm236_vm6, %v1486_v60, -inf }
 0xe2d   :  { %1492 = vmax.xlane.f32.xlu1 %v1491_v62  ;;  %1619 = vmax.xlane.f32.xlu2 %v1618_v63 }
 0xe31   :  { %v1615_v7 = vpop.f32.mrf.mxu3 }
 0xe32   :  { %v1616_v3 = vadd.f32 %v2996_v10, %v1615_v7 }
 0xe34   :  { %v1621_v5 = vsel %vm236_vm6, %v1616_v3, -inf }
 0xe35   :  { %1244 = vadd.xlane.f32.xlu1 %v1243_v4  ;;  %1622 = vmax.xlane.f32.xlu0 %v1621_v5 }
 0xe36   :  { %1371 = vadd.xlane.f32.xlu2 %v1370_v6 }
 0xe3d   :  { %1501 = vadd.xlane.f32.xlu1 %v1500_v11 }
 0xe49   :  { %2241 = vrot.lane.b32.xlu0 %v3003_v17, %s3329_s1 }
 0xe4e   :  { %1276 = vrot.lane.b32.xlu2 %v2956_v59, %s2398_s20 }
 0xe56   :  { %1640 = vrot.lane.b32.xlu2 %v2946_v58, %s3330_s22 }
 0xe98   :  { %v1363_v10 = vpop.xlane.xlu2 %1362 }
 0xe99   :  { %v1365_v13 = vsub.f32 %v1356_v45, %v1363_v10  ;;  %v2160_v10 = vld [vmem:[%s3292_s7 + $0x38] sm:$0xff] }
 0xe9a   :  { %1745 = vmatpush.msrb.mxu2 %v2160_v10 }
 0xe9b   :  { %v1368_v14 = vmul.f32 1.442695, %v1365_v13  ;;  %v2159_v13 = vld [vmem:[%s3292_s7 + $0x30] sm:$0xff] }
 0xe9c   :  { %1746 = vmatpush.msrb.mxu2 %v2159_v13 }
 0xe9d   :  { %2329 = vpow2.f32 %v1368_v14  ;;  %v2158_v14 = vld [vmem:[%s3292_s7 + $0x28] sm:$0xff] }
 0xe9e   :  { %1747 = vmatpush.msrb.mxu2 %v2158_v14 }
 0xea0   :  { %v1620_v15 = vpop.xlane.xlu2 %1619  ;;  %v1493_v16 = vpop.xlane.xlu1 %1492 }
 0xea1   :  { %v1624_v18 = vsub.f32 %v1588_v52, %v1620_v15  ;;  %v1495_v22 = vsub.f32 %v1486_v60, %v1493_v16  ;;  %v2157_v15 = vld [vmem:[%s3292_s7 + $0x20] sm:$0xff] }
 0xea2   :  { %1748 = vmatpush.msrb.mxu2 %v2157_v15 }
 0xea3   :  { %v2330_v19 = vpop.eup %2329  ;;  %v1626_v21 = vmul.f32 1.442695, %v1624_v18  ;;  %v1498_v17 = vmul.f32 1.442695, %v1495_v22 }
 0xea4   :  { %v1373_v23 = vsel %vm236_vm6, %v2330_v19, 0.0 }
 0xea5   :  { %2331 = vpow2.f32 %v1626_v21  ;;  %1374 = vadd.xlane.f32.xlu0 %v1373_v23 }
 0xea8   :  { %v1623_v24 = vpop.xlane.xlu0 %1622  ;;  %v1245_v25 = vpop.xlane.xlu1 %1244 }
 0xea9   :  { %v1372_v26 = vpop.xlane.xlu2 %1371  ;;  %2333 = vrcp.f32 %v1245_v25  ;;  %v1625_v28 = vsub.f32 %v1616_v3, %v1623_v24 }
 0xeaa   :  { %2335 = vrcp.f32 %v1372_v26 }
 0xeab   :  { %v2332_v58 = vpop.eup %2331  ;;  %2337 = vpow2.f32 %v1498_v17  ;;  %v1628_v31 = vmul.f32 1.442695, %v1625_v28 }
 0xeac   :  { %v1630_v29 = vsel %vm236_vm6, %v2332_v58, 0.0 }
 0xead   :  { %1631 = vadd.xlane.f32.xlu1 %v1630_v29  ;;  %2339 = vpow2.f32 %v1628_v31 }
 0xeaf   :  { %v2334_v30 = vpop.eup %2333 }
 0xeb0   :  { %v2336_v32 = vpop.eup %2335  ;;  %v1249_v33 = vmul.f32 %v2334_v30, %v2324_v1  ;;  %v1502_v8 = vpop.xlane.xlu1 %1501 }
 0xeb1   :  { %v2338_v37 = vpop.eup %2337  ;;  %v1378_v38 = vmul.f32 %v2336_v32, %v2326_v2  ;;  %v1277_v39 = vpop.permute.xlu2 %1276  ;;  %2341 = vrcp.f32 %v1502_v8 }
 0xeb2   :  { %1297 = vmatpush.msra.mxu1 %v1277_v39  ;;  %v1503_v41 = vsel %vm236_vm6, %v2338_v37, 0.0 }
 0xeb3   :  { %2138 = vmatmul.msk.f32.vlgmr.msra.gmra.mxu1 %vm236_vm6, %v1249_v33  ;;  %2143 = vmatmul.msk.f32.vlgmr.msrb.gmra.mxu0 %vm236_vm6, %v1378_v38  ;;  %v2340_v42 = vpop.eup %2339 }
 0xeb4   :  { %1427 = vmatpush.msrb.mxu1 %v2239_v40  ;;  %v1633_v34 = vsel %vm236_vm6, %v2340_v42, 0.0 }
 0xeb5   :  { %1504 = vadd.xlane.f32.xlu1 %v1503_v41 }
 0xeb7   :  { %v2342_v43 = vpop.eup %2341 }
 0xeb8   :  { %v1508_v47 = vmul.f32 %v2342_v43, %v2328_v35 }
 0xeb9   :  { %1666 = vrot.lane.b32.xlu0 %v2956_v59, %s3330_s22  ;;  %v1641_v49 = vpop.permute.xlu2 %1640 }
 0xebb   :  { %v2242_v44 = vpop.permute.xlu0 %2241 }
 0xebc   :  { %v2244_v45 = vunpack.i.h.bf16 %v2242_v44  ;;  %v2243_v46 = vunpack.i.l.bf16 %v2242_v44 }
 0xebd   :  { %1634 = vadd.xlane.f32.xlu1 %v1633_v34 }
 0xebe   :  { %1531 = vmatpush.msra.mxu0 %v2243_v46  ;;  %1557 = vmatpush.msra.mxu1 %v2244_v45 }
 0xebf   :  { %2149 = vmatmul.msk.f32.vlgmr.msra.gmra.mxu0 %vm236_vm6, %v1508_v47 }
 0xec0   :  { %1661 = vmatpush.msrb.mxu0 %v1641_v49 }
 0xf18   :  { %v1375_v50 = vpop.xlane.xlu0 %1374 }
 0xf19   :  { %2343 = vrcp.f32 %v1375_v50 }
 0xf1f   :  { %v2344_v51 = vpop.eup %2343 }
 0xf20   :  { %v1379_v52 = vmul.f32 %v2344_v51, %v2330_v19  ;;  %v1632_v53 = vpop.xlane.xlu1 %1631 }
 0xf21   :  { %2345 = vrcp.f32 %v1632_v53 }
 0xf22   :  { %2144 = vmatmul.msk.f32.vlgmr.msrb.gmra.mxu1 %vm236_vm6, %v1379_v52 }
 0xf27   :  { %v2346_v59 = vpop.eup %2345 }
 0xf28   :  { %v1638_v56 = vmul.f32 %v2346_v59, %v2332_v58  ;;  %v1505_v60 = vpop.xlane.xlu1 %1504 }
 0xf29   :  { %2347 = vrcp.f32 %v1505_v60 }
 0xf2a   :  { %2155 = vmatmul.msk.f32.vlgmr.msrb.gmra.mxu0 %vm236_vm6, %v1638_v56 }
 0xf2b   :  { %v1667_v61 = vpop.permute.xlu0 %1666 }
 0xf2c   :  { %1687 = vmatpush.msrb.mxu1 %v1667_v61 }
 0xf2f   :  { %v2348_v62 = vpop.eup %2347 }
 0xf30   :  { %v1509_v63 = vmul.f32 %v2348_v62, %v2338_v37  ;;  %v1403_v0 = vpop.f32.mrf.mxu0  ;;  %v1635_v1 = vpop.xlane.xlu1 %1634 }
 0xf31   :  { %1694 = vrot.lane.b32.xlu1 %v1403_v0, %s3331_s23  ;;  %2349 = vrcp.f32 %v1635_v1  ;;  %v1299_v4 = vpop.f32.mrf.mxu1 }
 0xf32   :  { %2150 = vmatmul.msk.f32.vlgmr.msra.gmra.mxu1 %vm236_vm6, %v1509_v63 }
 0xf37   :  { %v2350_v7 = vpop.eup %2349 }
 0xf38   :  { %v1639_v2 = vmul.f32 %v2350_v7, %v2340_v42 }
 0xf3a   :  { %2156 = vmatmul.msk.f32.vlgmr.msrb.gmra.mxu1 %vm236_vm6, %v1639_v2 }
 0xf3c   :  { %v1533_v3 = vpop.f32.mrf.mxu0 }
 0xf3d   :  { %1702 = vrot.lane.b32.xlu2 %v1533_v3, %s3332_s26  ;;  %v2255_v3 = vld [vmem:[%s3293_s8 + $0x1] ss:$0 sm:$0xff] }
 0xf97   :  { %v1703_v16 = vpop.permute.xlu2 %1702 }
 0xf9f   :  { %v1429_v5 = vpop.f32.mrf.mxu1 }
 0xfa0   :  { %1696 = vrot.lane.b32.xlu2 %v1429_v5, %s3331_s23 }
 0xfa3   :  { %v1695_v18 = vpop.permute.xlu1 %1694 }
 0xfa4   :  { %v1716_v19 = vsel %vm236_vm6, %v3022_v12, %v1695_v18 }
 0xfa5   :  { %v1718_v22 = vsel %vm778_vm7, %v1716_v19, %v1703_v16 }
 0xfa7   :  { %v1663_v6 = vpop.f32.mrf.mxu0 }
 0xfa8   :  { %1710 = vrot.lane.b32.xlu0 %v1663_v6, %s3333_s24 }
 0xfaf   :  { %v1559_v35 = vpop.f32.mrf.mxu1 }
 0xfb0   :  { %1704 = vrot.lane.b32.xlu0 %v1559_v35, %s3332_s26 }
 0xfb7   :  { %v1689_v11 = vpop.f32.mrf.mxu1 }
 0xfb8   :  { %1712 = vrot.lane.b32.xlu2 %v1689_v11, %s3333_s24  ;;  %v2256_v11 = vld [vmem:[%s3294_s9 + $0x1] ss:$0 sm:$0xff]  ;;  %s2079_s24 = sshll.u32 %s3301_s16, 4  ;;  %s2080_s24 = int_to_ptr.hbm [resolvable:$true] %s2079_s24 }
 0xffa   :  { %v1697_v23 = vpop.permute.xlu2 %1696 }
 0xffb   :  { %v1717_v24 = vsel %vm236_vm6, %v1299_v4, %v1697_v23 }
0x1012   :  { %v1713_v26 = vpop.permute.xlu2 %1712 }
0x101a   :  { %v1711_v21 = vpop.permute.xlu0 %1710 }
0x101b   :  { %v1720_v17 = vsel %vm781_vm8, %v1718_v22, %v1711_v21 }
0x101c   :  { %2161 = vmatmul.msk.f32.vlgmr.msrb.gmra.mxu2 %vm62_vm0, %v1720_v17 }
0x1022   :  { %v1705_v25 = vpop.permute.xlu0 %1704 }
0x1023   :  { %v1719_v58 = vsel %vm778_vm7, %v1717_v24, %v1705_v25 }
0x1024   :  { %v1721_v28 = vsel %vm781_vm8, %v1719_v58, %v1713_v26 }
0x1025   :  { %2162 = vmatmul.msk.f32.gmra.mxu2 %vm62_vm0, %v1721_v28 }
0x109f   :  { %v1750_v29 = vpop.f32.mrf.mxu2 }
0x10a0   :  { %v3082_v12 = vadd.f32 %v1750_v29, %v2911_v57 }
0x10a2   :  { %v1762_v30 = vsel %vm62_vm0, %v3082_v12, 0.0 }
0x10a3   :  { %1763 = vadd.xlane.f32.xlu0 %v1762_v30 }
0x10a8   :  { %v1753_v31 = vpop.f32.mrf.mxu2 }
0x10a9   :  { %v3087_v32 = vadd.f32 %v1753_v31, %v2916_v9 }
0x10ab   :  { %v1765_v33 = vsel %vm62_vm0, %v3087_v32, 0.0 }
0x10ac   :  { %1766 = vadd.xlane.f32.xlu1 %v1765_v33 }
0x1116   :  { %v1764_v37 = vpop.xlane.xlu0 %1763 }
0x1117   :  { %v1768_v38 = vmul.f32 %v1764_v37, %v2532_v20  ;;  %v2176_v37 = vld [vmem:[%s3295_s10 + $0xb8] sm:$0xff] }
0x1118   :  { %1882 = vmatpush.msra.mxu3 %v2176_v37 }
0x1119   :  { %v1770_v39 = vsub.f32 %v3082_v12, %v1768_v38  ;;  %v2175_v38 = vld [vmem:[%s3295_s10 + $0xb0] sm:$0xff] }
0x111a   :  { %1883 = vmatpush.msra.mxu3 %v2175_v38 }
0x111b   :  { %v1772_v8 = vmul.f32 %v1770_v39, %v1770_v39  ;;  %v1813_v35 = vmul.f32 %v2255_v3, %v1770_v39  ;;  %v2174_v39 = vld [vmem:[%s3295_s10 + $0xa8] sm:$0xff] }
0x111c   :  { %1884 = vmatpush.msra.mxu3 %v2174_v39  ;;  %v2182_v39 = vld [vmem:[%s3297_s12 + $0xd0] sm:$0xff] }
0x111d   :  { %v1774_v57 = vsel %vm62_vm0, %v1772_v8, 0.0  ;;  %v2173_v8 = vld [vmem:[%s3295_s10 + $0xa0] sm:$0xff] }
0x111e   :  { %1775 = vadd.xlane.f32.xlu2 %v1774_v57  ;;  %v2172_v57 = vld [vmem:[%s3295_s10 + $0x98] sm:$0xff]  ;;  %1885 = vmatpush.msra.mxu3 %v2173_v8  ;;  %v2181_v8 = vld [vmem:[%s3297_s12 + $0xc8] sm:$0xff] }
0x111f   :  { %v1767_v40 = vpop.xlane.xlu1 %1766 }
0x1120   :  { %v1769_v41 = vmul.f32 %v1767_v40, %v2532_v20  ;;  %v2171_v40 = vld [vmem:[%s3295_s10 + $0x90] sm:$0xff]  ;;  %1886 = vmatpush.msra.mxu3 %v2172_v57 }
0x1122   :  { %v1771_v42 = vsub.f32 %v3087_v32, %v1769_v41  ;;  %v2170_v41 = vld [vmem:[%s3295_s10 + $0x88] sm:$0xff]  ;;  %1887 = vmatpush.msra.mxu3 %v2171_v40  ;;  %v2180_v40 = vld [vmem:[%s3297_s12 + $0xc0] sm:$0xff] }
0x1124   :  { %v1773_v9 = vmul.f32 %v1771_v42, %v1771_v42  ;;  %v1814_v19 = vmul.f32 %v2255_v3, %v1771_v42  ;;  %v2169_v42 = vld [vmem:[%s3295_s10 + $0x80] sm:$0xff]  ;;  %1888 = vmatpush.msra.mxu3 %v2170_v41  ;;  %v2195_v3 = vld [vmem:[%s3297_s12 + $0x138] sm:$0xff] }
0x1125   :  { %1961 = vmatpush.msra.mxu0 %v2195_v3 }
0x1126   :  { %v1777_v43 = vsel %vm62_vm0, %v1773_v9, 0.0  ;;  %v2168_v9 = vld [vmem:[%s3295_s10 + $0x78] sm:$0xff]  ;;  %1889 = vmatpush.msra.mxu3 %v2169_v42 }
0x1127   :  { %1778 = vadd.xlane.f32.xlu0 %v1777_v43  ;;  %v2167_v43 = vld [vmem:[%s3295_s10 + $0x70] sm:$0xff] }
0x1128   :  { %1890 = vmatpush.msra.mxu3 %v2168_v9 }
0x112a   :  { %1891 = vmatpush.msra.mxu3 %v2167_v43 }
0x1191   :  { %v1776_v44 = vpop.xlane.xlu2 %1775 }
0x1192   :  { %v1780_v45 = vmul.f32 0.032258064, %v1776_v44  ;;  %v2166_v44 = vld [vmem:[%s3295_s10 + $0x68] sm:$0xff] }
0x1193   :  { %1892 = vmatpush.msra.mxu3 %v2166_v44  ;;  %v2258_v44 = vld [vmem:[%s3298_s13 + $0x1] ss:$0 sm:$0xff] }
0x1194   :  { %2351 = vrsqrt.f32 %v1780_v45  ;;  %vm1789_vm6 = vcmp.eq.f32.partialorder %v1780_v45, inf  ;;  %v1792_v61 = vand.u32 2147483648, %v1780_v45  ;;  %vm1791_vm7 = vcmp.eq.f32.partialorder %v1780_v45, 0.0 }
0x119a   :  { %v2352_v46 = vpop.eup %2351  ;;  %v1779_v34 = vpop.xlane.xlu0 %1778 }
0x119b   :  { %v1783_v47 = vmul.f32 %v2352_v46, %v1780_v45  ;;  %v1781_v49 = vmul.f32 0.032258064, %v1779_v34 }
0x119d   :  { %2353 = vrsqrt.f32 %v1781_v49  ;;  %v1784_v50 = vmul.f32 %v2352_v46, %v1783_v47  ;;  %vm1801_vm8 = vcmp.eq.f32.partialorder %v1781_v49, inf  ;;  %v1804_v6 = vand.u32 2147483648, %v1781_v49 }
0x119e   :  { %vm1803_vm9 = vcmp.eq.f32.partialorder %v1781_v49, 0.0 }
0x119f   :  { %v1785_v51 = vmul.f32 0.5, %v1784_v50 }
0x11a1   :  { %v1786_v52 = vsub.f32 1.5, %v1785_v51 }
0x11a3   :  { %v2354_v53 = vpop.eup %2353  ;;  %v1787_v59 = vmul.f32 %v2352_v46, %v1786_v52 }
0x11a4   :  { %v1795_v56 = vmul.f32 %v2354_v53, %v1781_v49 }
0x11a5   :  { %v1788_v60 = vmul.f32 %v1787_v59, %v1780_v45 }
0x11a6   :  { %v1796_v62 = vmul.f32 %v2354_v53, %v1795_v56 }
0x11a7   :  { %v1790_v63 = vsel %vm1789_vm6, %v1780_v45, %v1788_v60  ;;  %v2165_v45 = vld [vmem:[%s3295_s10 + $0x60] sm:$0xff]  ;;  %v2203_v60 = vld [vmem:[%s3297_s12 + $0x178] sm:$0xff] }
0x11a8   :  { %v1793_v0 = vsel %vm1791_vm7, %v1792_v61, %v1790_v63  ;;  %v1797_v1 = vmul.f32 0.5, %v1796_v62  ;;  %1893 = vmatpush.msra.mxu3 %v2165_v45  ;;  %1992 = vmatpush.msra.mxu1 %v2203_v60  ;;  %v2202_v61 = vld [vmem:[%s3297_s12 + $0x170] sm:$0xff]  ;;  %v2201_v62 = vld [vmem:[%s3297_s12 + $0x168] sm:$0xff]  ;;  %v2200_v63 = vld [vmem:[%s3297_s12 + $0x160] sm:$0xff] }
0x11a9   :  { %v1806_v7 = vadd.f32 1e-06, %v1793_v0  ;;  %v2199_v0 = vld [vmem:[%s3297_s12 + $0x158] sm:$0xff] }
0x11aa   :  { %v1798_v2 = vsub.f32 1.5, %v1797_v1  ;;  %1993 = vmatpush.msra.mxu1 %v2202_v61  ;;  %v2198_v1 = vld [vmem:[%s3297_s12 + $0x150] sm:$0xff] }
0x11ab   :  { %2355 = vrcp.f32 %v1806_v7  ;;  %v2197_v7 = vld [vmem:[%s3297_s12 + $0x148] sm:$0xff] }
0x11ac   :  { %v1799_v4 = vmul.f32 %v2354_v53, %v1798_v2  ;;  %1994 = vmatpush.msra.mxu1 %v2201_v62  ;;  %v2196_v2 = vld [vmem:[%s3297_s12 + $0x140] sm:$0xff] }
0x11ae   :  { %v1800_v5 = vmul.f32 %v1799_v4, %v1781_v49  ;;  %1995 = vmatpush.msra.mxu1 %v2200_v63  ;;  %v2194_v4 = vld [vmem:[%s3297_s12 + $0x130] sm:$0xff] }
0x11af   :  { %1962 = vmatpush.msra.mxu0 %v2194_v4 }
0x11b0   :  { %v1802_v10 = vsel %vm1801_vm8, %v1781_v49, %v1800_v5  ;;  %1996 = vmatpush.msra.mxu1 %v2199_v0  ;;  %v2193_v5 = vld [vmem:[%s3297_s12 + $0x128] sm:$0xff] }
0x11b1   :  { %v2356_v13 = vpop.eup %2355  ;;  %v1805_v14 = vsel %vm1803_vm9, %v1804_v6, %v1802_v10  ;;  %v2257_v6 = vld [vmem:[%s3296_s11 + $0x1] ss:$0 sm:$0xff]  ;;  %1963 = vmatpush.msra.mxu0 %v2193_v5  ;;  %s2411_s11 = smov [#allocation2]  }
0x11b2   :  { %v1815_v15 = vmul.f32 %v2356_v13, %v1813_v35  ;;  %v1807_v16 = vadd.f32 1e-06, %v1805_v14  ;;  %1997 = vmatpush.msra.mxu1 %v2198_v1  ;;  %v2192_v35 = vld [vmem:[%s3297_s12 + $0x120] sm:$0xff]  ;;  %v2190_v14 = vld [vmem:[%s3297_s12 + $0x110] sm:$0xff]  ;;  %s2077_s27 = sshll.u32 %s2411_s11, 4  ;;  %s2078_s27 = int_to_ptr.vmem [resolvable:$true] %s2077_s27 }
0x11b3   :  { %1964 = vmatpush.msra.mxu0 %v2192_v35 }
0x11b4   :  { %v1820_v18 = vadd.f32 %v2256_v11, %v1815_v15  ;;  %2357 = vrcp.f32 %v1807_v16  ;;  %1998 = vmatpush.msra.mxu1 %v2197_v7  ;;  %v2189_v16 = vld [vmem:[%s3297_s12 + $0x108] sm:$0xff] }
0x11b6   :  { %1851 = vrot.lane.b32.xlu2 %v1820_v18, %s3334_s18  ;;  %v1837_v17 = vrot.slane %v1820_v18, 7  ;;  %v1843_v25 = vrot.slane %v1820_v18, 1  ;;  %1999 = vmatpush.msra.mxu1 %v2196_v2  ;;  %v2188_v18 = vld [vmem:[%s3297_s12 + $0x100] sm:$0xff] }
0x11ba   :  { %v2358_v21 = vpop.eup %2357 }
0x11bb   :  { %v1816_v22 = vmul.f32 %v2358_v21, %v1814_v19  ;;  %v2187_v19 = vld [vmem:[%s3297_s12 + $0xf8] sm:$0xff] }
0x11bd   :  { %v1821_v23 = vadd.f32 %v2256_v11, %v1816_v22  ;;  %v2191_v11 = vld [vmem:[%s3297_s12 + $0x118] sm:$0xff] }
0x11be   :  { %1965 = vmatpush.msra.mxu0 %v2191_v11 }
0x11bf   :  { %1853 = vrot.lane.b32.xlu0 %v1821_v23, %s3334_s18  ;;  %v1838_v24 = vrot.slane %v1821_v23, 7  ;;  %v1844_v26 = vrot.slane %v1821_v23, 1  ;;  %v2186_v23 = vld [vmem:[%s3297_s12 + $0xf0] sm:$0xff] }
0x11c0   :  { %1966 = vmatpush.msra.mxu0 %v2190_v14 }
0x11c1   :  { %v1846_v58 = vsel %vm907_vm14, %v1844_v26, %v1843_v25  ;;  %v1845_v28 = vsel %vm907_vm14, %v1843_v25, %v1844_v26  ;;  %v1840_v29 = vsel %vm896_vm1, %v1838_v24, %v1837_v17  ;;  %v1839_v30 = vsel %vm896_vm1, %v1837_v17, %v1838_v24  ;;  %v2185_v24 = vld [vmem:[%s3297_s12 + $0xe8] sm:$0xff] }
0x11c2   :  { %v1848_v31 = vsel %vm2758_vm13, %v1846_v58, 0.0  ;;  %v1847_v33 = vsel %vm2763_vm15, %v1845_v28, 0.0  ;;  %v1841_v34 = vsel %vm2792_vm2, %v1840_v29, 0.0  ;;  %v1842_v52 = vsel %vm2801_vm5, %v1839_v30, 0.0  ;;  %1967 = vmatpush.msra.mxu0 %v2189_v16  ;;  %v2184_v29 = vld [vmem:[%s3297_s12 + $0xe0] sm:$0xff] }
0x11c3   :  { %1861 = vrot.lane.b32.xlu2 %v1848_v31, %s2398_s20  ;;  %1859 = vrot.lane.b32.xlu1 %v1847_v33, %s2398_s20  ;;  %v2183_v31 = vld [vmem:[%s3297_s12 + $0xd8] sm:$0xff] }
0x11c4   :  { %1968 = vmatpush.msra.mxu0 %v2188_v18 }
0x11c6   :  { %1969 = vmatpush.msra.mxu0 %v2187_v19 }
0x11c8   :  { %1970 = vmatpush.msra.mxu0 %v2186_v23 }
0x11ca   :  { %1971 = vmatpush.msra.mxu0 %v2185_v24 }
0x11cc   :  { %1972 = vmatpush.msra.mxu0 %v2184_v29 }
0x11ce   :  { %1973 = vmatpush.msra.mxu0 %v2183_v31 }
0x11d0   :  { %1974 = vmatpush.msra.mxu0 %v2182_v39 }
0x11d2   :  { %1975 = vmatpush.msra.mxu0 %v2181_v8 }
0x11d4   :  { %1976 = vmatpush.msra.mxu0 %v2180_v40 }
0x1210   :  { %v1852_v46 = vpop.permute.xlu2 %1851 }
0x1211   :  { %v1865_v47 = vsel %vm62_vm0, %v1841_v34, %v1852_v46 }
0x121d   :  { %v1862_v59 = vpop.permute.xlu2 %1861 }
0x1231   :  { %v1854_v51 = vpop.permute.xlu0 %1853 }
0x1232   :  { %v1866_v53 = vsel %vm62_vm0, %v1842_v52, %v1854_v51 }
0x1233   :  { %v1868_v56 = vsel %vm934_vm3, %v1866_v53, %v1862_v59 }
0x1235   :  { %v1860_v49 = vpop.permute.xlu1 %1859 }
0x1236   :  { %v1867_v50 = vsel %vm934_vm3, %v1865_v47, %v1860_v49 }
0x1237   :  { %2178 = vmatmul.msk.f32.vlgmr.msra.gmra.mxu3 %vm940_vm4, %v1867_v50 }
0x123f   :  { %2179 = vmatmul.msk.f32.gmra.mxu3 %vm940_vm4, %v1868_v56 }
0x12ba   :  { %v1895_v10 = vpop.f32.mrf.mxu3 }
0x12bb   :  { %v1896_v13 = vadd.f32 %v2257_v6, %v1895_v10 }
0x12bd   :  { %v1901_v15 = vmax.f32 %v1896_v13, 0.0 }
0x12bf   :  { %1944 = vrot.lane.b32.xlu1 %v1901_v15, %s2398_s20  ;;  %v1930_v25 = vrot.slane %v1901_v15, 7  ;;  %v1936_v26 = vrot.slane %v1901_v15, 1 }
0x12c2   :  { %v1898_v21 = vpop.f32.mrf.mxu3 }
0x12c3   :  { %v1899_v22 = vadd.f32 %v2257_v6, %v1898_v21 }
0x12c5   :  { %v1902_v17 = vmax.f32 %v1899_v22, 0.0 }
0x12c7   :  { %v1931_v58 = vrot.slane %v1902_v17, 7  ;;  %v1937_v28 = vrot.slane %v1902_v17, 1  ;;  %1946 = vrot.lane.b32.xlu0 %v1902_v17, %s2398_s20 }
0x12c9   :  { %v1938_v30 = vsel %vm907_vm14, %v1936_v26, %v1937_v28  ;;  %v1933_v33 = vsel %vm896_vm1, %v1931_v58, %v1930_v25  ;;  %v1932_v37 = vsel %vm896_vm1, %v1930_v25, %v1931_v58  ;;  %v1939_v57 = vsel %vm907_vm14, %v1937_v28, %v1936_v26  ;;  %v2259_v26 = vld [vmem:[%s3299_s14] ss:$0 sm:$0xff] }
0x12ca   :  { %v1940_v38 = vsel %vm2763_vm15, %v1938_v30, 0.0  ;;  %v1941_v36 = vsel %vm2758_vm13, %v1939_v57, 0.0  ;;  %v1934_v42 = vsel %vm2792_vm2, %v1933_v33, 0.0  ;;  %v1935_v43 = vsel %vm2801_vm5, %v1932_v37, 0.0  ;;  %v2260_v33 = vld [vmem:[%s3300_s15] ss:$0 sm:$0xff] }
0x12cb   :  { %2205 = vmatmul.msk.f32.vlgmr.msra.gmra.mxu1 %vm934_vm3, %v1940_v38  ;;  %s2412_s15 = smov 128  }
0x12d3   :  { %2206 = vmatmul.msk.f32.gmra.mxu1 %vm934_vm3, %v1941_v36 }
0x1331   :  { %v1945_v41 = vpop.permute.xlu1 %1944 }
0x1332   :  { %v1950_v9 = vsel %vm934_vm3, %v1934_v42, %v1945_v41 }
0x1333   :  { %1977 = vmatmul.f32.vlgmr.msra.gmra.mxu0 %v1950_v9 }
0x1339   :  { %v1947_v27 = vpop.permute.xlu0 %1946 }
0x133a   :  { %v1951_v54 = vsel %vm934_vm3, %v1935_v43, %v1947_v27 }
0x133b   :  { %1980 = vmatmul.f32.gmra.mxu0 %v1951_v54 }
0x1348   :  { %v2001_v45 = vpop.f32.mrf.mxu1 }
0x1350   :  { %v2004_v55 = vpop.f32.mrf.mxu1 }
0x13b0   :  { %v1978_v46 = vpop.f32.mrf.mxu0 }
0x13b1   :  { %v1979_v34 = vadd.f32 %v2258_v44, %v1978_v46 }
0x13b3   :  { %v2002_v47 = vadd.f32 %v2001_v45, %v1979_v34 }
0x13b5   :  { %v2007_v48 = vadd.f32 %v2002_v47, %v3082_v12 }
0x13b7   :  { %v2011_v49 = vsel %vm62_vm0, %v2007_v48, 0.0 }
0x13b8   :  { %2012 = vadd.xlane.f32.xlu2 %v2011_v49  ;;  %v1981_v50 = vpop.f32.mrf.mxu0 }
0x13b9   :  { %v1982_v51 = vadd.f32 %v2258_v44, %v1981_v50 }
0x13bb   :  { %v2005_v52 = vadd.f32 %v2004_v55, %v1982_v51 }
0x13bd   :  { %v2008_v53 = vadd.f32 %v2005_v52, %v3087_v32 }
0x13bf   :  { %v2014_v59 = vsel %vm62_vm0, %v2008_v53, 0.0 }
0x13c0   :  { %2015 = vadd.xlane.f32.xlu1 %v2014_v59 }
0x142b   :  { %v2013_v56 = vpop.xlane.xlu2 %2012 }
0x142c   :  { %v2017_v60 = vmul.f32 %v2013_v56, %v2532_v20 }
0x142e   :  { %v2019_v61 = vsub.f32 %v2007_v48, %v2017_v60 }
0x1430   :  { %v2021_v62 = vmul.f32 %v2019_v61, %v2019_v61  ;;  %v2062_v30 = vmul.f32 %v2259_v26, %v2019_v61 }
0x1432   :  { %v2023_v63 = vsel %vm62_vm0, %v2021_v62, 0.0 }
0x1433   :  { %2024 = vadd.xlane.f32.xlu0 %v2023_v63  ;;  %v2016_v12 = vpop.xlane.xlu1 %2015 }
0x1434   :  { %v2018_v0 = vmul.f32 %v2016_v12, %v2532_v20 }
0x1436   :  { %v2020_v1 = vsub.f32 %v2008_v53, %v2018_v0 }
0x1438   :  { %v2022_v7 = vmul.f32 %v2020_v1, %v2020_v1  ;;  %v2063_v57 = vmul.f32 %v2259_v26, %v2020_v1 }
0x143a   :  { %v2026_v2 = vsel %vm62_vm0, %v2022_v7, 0.0 }
0x143b   :  { %2027 = vadd.xlane.f32.xlu2 %v2026_v2 }
0x14a6   :  { %v2025_v32 = vpop.xlane.xlu0 %2024 }
0x14a7   :  { %v2029_v3 = vmul.f32 0.032258064, %v2025_v32 }
0x14a9   :  { %2359 = vrsqrt.f32 %v2029_v3  ;;  %vm2038_vm13 = vcmp.eq.f32.partialorder %v2029_v3, inf  ;;  %v2041_v19 = vand.u32 2147483648, %v2029_v3  ;;  %vm2040_vm14 = vcmp.eq.f32.partialorder %v2029_v3, 0.0 }
0x14ae   :  { %v2028_v4 = vpop.xlane.xlu2 %2027 }
0x14af   :  { %v2360_v5 = vpop.eup %2359  ;;  %v2030_v6 = vmul.f32 0.032258064, %v2028_v4 }
0x14b0   :  { %v2032_v35 = vmul.f32 %v2360_v5, %v2029_v3 }
0x14b1   :  { %2361 = vrsqrt.f32 %v2030_v6  ;;  %vm2050_vm15 = vcmp.eq.f32.partialorder %v2030_v6, inf  ;;  %v2053_v28 = vand.u32 2147483648, %v2030_v6  ;;  %vm2052_vm1 = vcmp.eq.f32.partialorder %v2030_v6, 0.0 }
0x14b2   :  { %v2033_v11 = vmul.f32 %v2360_v5, %v2032_v35 }
0x14b4   :  { %v2034_v10 = vmul.f32 0.5, %v2033_v11 }
0x14b6   :  { %v2035_v13 = vsub.f32 1.5, %v2034_v10 }
0x14b7   :  { %v2362_v14 = vpop.eup %2361 }
0x14b8   :  { %v2036_v15 = vmul.f32 %v2360_v5, %v2035_v13  ;;  %v2044_v16 = vmul.f32 %v2362_v14, %v2030_v6 }
0x14ba   :  { %v2037_v20 = vmul.f32 %v2036_v15, %v2029_v3  ;;  %v2045_v18 = vmul.f32 %v2362_v14, %v2044_v16 }
0x14bc   :  { %v2039_v21 = vsel %vm2038_vm13, %v2029_v3, %v2037_v20  ;;  %v2046_v22 = vmul.f32 0.5, %v2045_v18 }
0x14bd   :  { %v2042_v23 = vsel %vm2040_vm14, %v2041_v19, %v2039_v21 }
0x14be   :  { %v2047_v17 = vsub.f32 1.5, %v2046_v22  ;;  %v2055_v24 = vadd.f32 1e-06, %v2042_v23 }
0x14c0   :  { %v2048_v25 = vmul.f32 %v2362_v14, %v2047_v17  ;;  %2363 = vrcp.f32 %v2055_v24 }
0x14c2   :  { %v2049_v58 = vmul.f32 %v2048_v25, %v2030_v6 }
0x14c4   :  { %v2051_v29 = vsel %vm2050_vm15, %v2030_v6, %v2049_v58 }
0x14c5   :  { %v2054_v31 = vsel %vm2052_vm1, %v2053_v28, %v2051_v29 }
0x14c6   :  { %v2364_v37 = vpop.eup %2363  ;;  %v2056_v38 = vadd.f32 1e-06, %v2054_v31 }
0x14c7   :  { %v2064_v39 = vmul.f32 %v2364_v37, %v2062_v30 }
0x14c8   :  { %2365 = vrcp.f32 %v2056_v38 }
0x14c9   :  { %v2069_v8 = vadd.f32 %v2260_v33, %v2064_v39 }
0x14cb   :  { %2071 = vst.msk [vmem:[#allocation2] sm:$0xff] %vm62_vm0, %v2069_v8 }
0x14ce   :  { %v2366_v36 = vpop.eup %2365 }
0x14cf   :  { %v2065_v40 = vmul.f32 %v2366_v36, %v2063_v57 }
0x14d1   :  { %v2070_v41 = vadd.f32 %v2260_v33, %v2065_v40 }
0x14d3   :  { %2072 = vst.msk [vmem:[#allocation2 + $0x8] sm:$0xff] %vm62_vm0, %v2070_v41 }
0x14d4   :  { %2085 = dma.vmem_to_hbm [thread:$0]  %s2078_s27, 256, %s2080_s24, [#allocation3], %s2412_s15, %s2412_s15, %s3331_s23  }
0x14d5   :  { %2393 = dma.done.wait [#allocation3], 256  }
0x14d6   :  { %2394 = vsyncadd [#allocation3], 4294967040 }
0x14d7   :  { %2090 = vsyncpa [#allocation3], 1 }

</bundles_post_ra>
